<compile_context>
chip_gen: v7x
topology: tpu7x:2x2x1
jax: 0.10.0
libtpu: 0.0.40
codegen_flags: <defaults>
</compile_context>

<pallas_src>
import functools

import jax
import jax.numpy as jnp
from jax.experimental import pallas as pl
from jax.experimental.pallas import tpu as pltpu


_DEFAULT_ROW_TILE = 256  # multiple of 8; sized so fp32 row tiles + bf16
                         # weights + the (tm, mlp_hidden) GELU intermediate
                         # stay far under v7x's 64 MiB VMEM at ViT-S scale.


def _row_tile(m, target=_DEFAULT_ROW_TILE):
    # Full single block for small problems (block == array dims is always
    # legal); otherwise a multiple-of-8 tile with trailing-block masking.
    return m if m <= target else target


# ----------------------------------------------------------------------------
# Pallas kernels
# ----------------------------------------------------------------------------

def _matmul_bias_kernel(x_ref, w_ref, b_ref, o_ref):
    # o = x @ w + b        x:(tm,K) fp32  w:(K,N) bf16  b:(1,N) fp32
    o_ref[...] = (
        jnp.dot(x_ref[...].astype(jnp.bfloat16), w_ref[...],
                preferred_element_type=jnp.float32)
        + b_ref[...]
    )


def matmul_bias(x, w, b):
    M, K = x.shape
    N = w.shape[1]
    tm = _row_tile(M)
    return pl.pallas_call(
        _matmul_bias_kernel,
        out_shape=jax.ShapeDtypeStruct((M, N), jnp.float32),
        grid=(pl.cdiv(M, tm),),
        in_specs=[
            pl.BlockSpec((tm, K), lambda i: (i, 0)),
            pl.BlockSpec((K, N), lambda i: (0, 0)),
            pl.BlockSpec((1, N), lambda i: (0, 0)),
        ],
        out_specs=pl.BlockSpec((tm, N), lambda i: (i, 0)),
        compiler_params=pltpu.CompilerParams(
            dimension_semantics=("parallel",)),
    )(x, w, b.reshape(1, N))


def _attn_block_kernel(x_ref, g_ref, b_ref, qkv_w_ref, qkv_b_ref,
                       proj_w_ref, proj_b_ref, o_ref, *, num_heads, eps):
    # One batch element per grid step; all heads processed here.
    # x:(1,S,D) fp32, qkv_w:(D,3D) bf16, proj_w:(H,DH,D) bf16.
    x = x_ref[0]                                   # (S, D) fp32
    S, D = x.shape
    DH = D // num_heads
    scale = DH ** -0.5

    # LayerNorm (fp32 statistics).
    mu = jnp.mean(x, axis=-1, keepdims=True)
    var = jnp.mean((x - mu) ** 2, axis=-1, keepdims=True)
    xn = (x - mu) * jax.lax.rsqrt(var + eps) * g_ref[...] + b_ref[...]

    # Fused QKV projection (bf16 MXU, fp32 accumulate).
    qkv = (jnp.dot(xn.astype(jnp.bfloat16), qkv_w_ref[...],
                   preferred_element_type=jnp.float32)
           + qkv_b_ref[...])                       # (S, 3D) fp32

    # Residual + output-projection bias; per-head attention accumulates into it.
    acc = x + proj_b_ref[...]                      # (S, D) fp32
    for h in range(num_heads):
        q_h = qkv[:, h * DH:(h + 1) * DH]
        k_h = qkv[:, D + h * DH:D + (h + 1) * DH]
        v_h = qkv[:, 2 * D + h * DH:2 * D + (h + 1) * DH]

        # q @ k^T via dot_general on the last dims (no materialized transpose).
        s = jax.lax.dot_general(
            q_h.astype(jnp.bfloat16), k_h.astype(jnp.bfloat16),
            (((1,), (1,)), ((), ())),
            preferred_element_type=jnp.float32) * scale       # (S, S)
        s = s - jnp.max(s, axis=-1, keepdims=True)
        p = jnp.exp(s)
        inv_l = pl.reciprocal(jnp.sum(p, axis=-1, keepdims=True), approx=True)

        a_h = jnp.dot(p.astype(jnp.bfloat16), v_h.astype(jnp.bfloat16),
                      preferred_element_type=jnp.float32) * inv_l  # (S, DH)
        # Per-head slice of the output projection: sum_h a_h @ W_proj[h].
        acc = acc + jnp.dot(a_h.astype(jnp.bfloat16), proj_w_ref[h],
                            preferred_element_type=jnp.float32)

    o_ref[0] = acc


def attn_block(x, ln_g, ln_b, qkv_w, qkv_b, proj_w, proj_b, *,
               num_heads, eps=1e-6):
    B, S, D = x.shape
    DH = D // num_heads
    proj_w_h = proj_w.reshape(num_heads, DH, D)    # free contiguous reshape
    kernel = functools.partial(_attn_block_kernel, num_heads=num_heads, eps=eps)
    full2 = lambda b: (0, 0)
    return pl.pallas_call(
        kernel,
        out_shape=jax.ShapeDtypeStruct((B, S, D), jnp.float32),
        grid=(B,),
        in_specs=[
            pl.BlockSpec((1, S, D), lambda b: (b, 0, 0)),
            pl.BlockSpec((1, D), full2),
            pl.BlockSpec((1, D), full2),
            pl.BlockSpec((D, 3 * D), full2),
            pl.BlockSpec((1, 3 * D), full2),
            pl.BlockSpec((num_heads, DH, D), lambda b: (0, 0, 0)),
            pl.BlockSpec((1, D), full2),
        ],
        out_specs=pl.BlockSpec((1, S, D), lambda b: (b, 0, 0)),
        compiler_params=pltpu.CompilerParams(
            dimension_semantics=("parallel",)),
    )(x, ln_g.reshape(1, D), ln_b.reshape(1, D), qkv_w,
      qkv_b.reshape(1, 3 * D), proj_w_h, proj_b.reshape(1, D))


def _mlp_block_kernel(x_ref, g_ref, b_ref, w1_ref, b1_ref, w2_ref, b2_ref,
                      o_ref, *, eps):
    # Fused LN -> fc1 -> GELU -> fc2 -> residual add on a (tm, D) row tile.
    x = x_ref[...]                                 # fp32
    mu = jnp.mean(x, axis=-1, keepdims=True)
    var = jnp.mean((x - mu) ** 2, axis=-1, keepdims=True)
    xn = (x - mu) * jax.lax.rsqrt(var + eps) * g_ref[...] + b_ref[...]

    h = (jnp.dot(xn.astype(jnp.bfloat16), w1_ref[...],
                 preferred_element_type=jnp.float32) + b1_ref[...])
    # TODO(synk): PyTorch nn.GELU defaults to exact erf; using tanh approx here.
    h = jax.nn.gelu(h, approximate=True)
    o_ref[...] = x + (jnp.dot(h.astype(jnp.bfloat16), w2_ref[...],
                              preferred_element_type=jnp.float32)
                      + b2_ref[...])


def mlp_block(x, ln_g, ln_b, w1, b1, w2, b2, *, eps=1e-6):
    B, S, D = x.shape
    Hm = w1.shape[1]
    M = B * S
    x2 = x.reshape(M, D)
    tm = _row_tile(M)
    full2 = lambda i: (0, 0)
    out = pl.pallas_call(
        functools.partial(_mlp_block_kernel, eps=eps),
        out_shape=jax.ShapeDtypeStruct((M, D), jnp.float32),
        grid=(pl.cdiv(M, tm),),
        in_specs=[
            pl.BlockSpec((tm, D), lambda i: (i, 0)),
            pl.BlockSpec((1, D), full2),
            pl.BlockSpec((1, D), full2),
            pl.BlockSpec((D, Hm), full2),
            pl.BlockSpec((1, Hm), full2),
            pl.BlockSpec((Hm, D), full2),
            pl.BlockSpec((1, D), full2),
        ],
        out_specs=pl.BlockSpec((tm, D), lambda i: (i, 0)),
        compiler_params=pltpu.CompilerParams(
            dimension_semantics=("parallel",)),
    )(x2, ln_g.reshape(1, D), ln_b.reshape(1, D), w1, b1.reshape(1, Hm),
      w2, b2.reshape(1, D))
    return out.reshape(B, S, D)


def _head_kernel(z_ref, g_ref, b_ref, w1_ref, b1_ref, w2_ref,
                 z_out_ref, y_out_ref, *, eps):
    # Fused: final LayerNorm (cls rows only) -> Linear(D,D)+bias -> ReLU ->
    # Linear(D,n_cls) (the nonlinear 1x1-conv clusterer on a 1x1 map).
    z = z_ref[...]                                 # (tb, D) fp32
    mu = jnp.mean(z, axis=-1, keepdims=True)
    var = jnp.mean((z - mu) ** 2, axis=-1, keepdims=True)
    zn = (z - mu) * jax.lax.rsqrt(var + eps) * g_ref[...] + b_ref[...]
    z_out_ref[...] = zn

    h = (jnp.dot(zn.astype(jnp.bfloat16), w1_ref[...],
                 preferred_element_type=jnp.float32) + b1_ref[...])
    h = jnp.maximum(h, 0.0)
    y_out_ref[...] = jnp.dot(h.astype(jnp.bfloat16), w2_ref[...],
                             preferred_element_type=jnp.float32)


def cls_head(z_in, ln_g, ln_b, w1, b1, w2, *, eps=1e-6):
    B, D = z_in.shape
    n_cls = w2.shape[1]
    tb = _row_tile(B)
    full2 = lambda i: (0, 0)
    z_out, y_out = pl.pallas_call(
        functools.partial(_head_kernel, eps=eps),
        out_shape=(jax.ShapeDtypeStruct((B, D), jnp.float32),
                   jax.ShapeDtypeStruct((B, n_cls), jnp.float32)),
        grid=(pl.cdiv(B, tb),),
        in_specs=[
            pl.BlockSpec((tb, D), lambda i: (i, 0)),
            pl.BlockSpec((1, D), full2),
            pl.BlockSpec((1, D), full2),
            pl.BlockSpec((D, D), full2),
            pl.BlockSpec((1, D), full2),
            pl.BlockSpec((D, n_cls), full2),
        ],
        out_specs=(pl.BlockSpec((tb, D), lambda i: (i, 0)),
                   pl.BlockSpec((tb, n_cls), lambda i: (i, 0))),
        compiler_params=pltpu.CompilerParams(
            dimension_semantics=("parallel",)),
    )(z_in, ln_g.reshape(1, D), ln_b.reshape(1, D), w1, b1.reshape(1, D), w2)
    return z_out, y_out


# ----------------------------------------------------------------------------
# Model wrapper (glue in plain JAX)
# ----------------------------------------------------------------------------

def dino_classifier_forward(img, params, *, patch_size, num_heads):
    """img: (B, C, H, W) float32 NCHW.  Returns {'z_tokens', 'y_pixel'}."""
    B, C, H, W = img.shape
    P = patch_size
    nH, nW = H // P, W // P
    D = params["patch_w"].shape[1]

    # --- patch embedding: Conv2d(C, D, kernel=P, stride=P) as a matmul ------
    patches = (
        img.reshape(B, C, nH, P, nW, P)
        .transpose(0, 2, 4, 1, 3, 5)               # (B, nH, nW, C, P, P)
        .reshape(B * nH * nW, C * P * P)
    )
    x = matmul_bias(patches, params["patch_w"], params["patch_b"])
    x = x.reshape(B, nH * nW, D)

    # --- cls token + positional embedding -----------------------------------
    cls = jnp.broadcast_to(params["cls_token"], (B, 1, D))
    x = jnp.concatenate([cls, x], axis=1)           # (B, S, D) fp32
    x = x + params["pos_embed"]                     # (1, S, D) broadcast

    # --- transformer blocks (pre-LN): 2 fused pallas_calls per block --------
    for blk in params["blocks"]:
        x = attn_block(x, blk["ln1_g"], blk["ln1_b"], blk["qkv_w"],
                       blk["qkv_b"], blk["proj_w"], blk["proj_b"],
                       num_heads=num_heads)
        x = mlp_block(x, blk["ln2_g"], blk["ln2_b"], blk["fc1_w"],
                      blk["fc1_b"], blk["fc2_w"], blk["fc2_b"])

    # --- final norm fused with the classifier head, cls rows only -----------
    # (get_intermediate_layers applies norm to all tokens, but only the cls
    #  row is consumed downstream; LayerNorm is per-row so this is exact.)
    z_in = x[:, 0, :]                               # (B, D)
    # TODO(synk): Dropout2d(p=0.1) treated as identity (inference behaviour).
    z, y = cls_head(z_in, params["ln_g"], params["ln_b"],
                    params["c1_w"], params["c1_b"], params["c2_w"])

    z_tokens = z[:, :, None, None]                  # (B, n_feats, 1, 1)
    y_pixel = y[:, :, None, None]                   # (B, n_cls, 1, 1)
    return {"z_tokens": z_tokens, "y_pixel": y_pixel}


# ----------------------------------------------------------------------------
# Deterministic parameter construction (weights stored in bf16 for the MXU)
# ----------------------------------------------------------------------------

def init_params(key, *, in_chans, patch_size, embed_dim, depth, num_heads,
                mlp_hidden, n_cls, seq_len):
    del num_heads
    ks = iter(jax.random.split(key, 64))

    def nrm(shape, dtype=jnp.bfloat16, scale=0.02):
        w = scale * jax.random.normal(next(ks), shape, dtype=jnp.float32)
        return w.astype(dtype)

    D = embed_dim
    params = {
        "patch_w": nrm((in_chans * patch_size * patch_size, D)),
        "patch_b": jnp.zeros((D,), jnp.float32),
        "cls_token": nrm((1, 1, D), dtype=jnp.float32),
        "pos_embed": nrm((1, seq_len, D), dtype=jnp.float32),
        "ln_g": jnp.ones((D,), jnp.float32),
        "ln_b": jnp.zeros((D,), jnp.float32),
        # nonlinear clusterer: Conv2d(D, D, 1, bias=True) -> ReLU ->
        #                      Conv2d(D, n_cls, 1, bias=False)
        "c1_w": nrm((D, D)),
        "c1_b": jnp.zeros((D,), jnp.float32),
        "c2_w": nrm((D, n_cls)),
        "blocks": [],
    }
    for _ in range(depth):
        params["blocks"].append({
            "ln1_g": jnp.ones((D,), jnp.float32),
            "ln1_b": jnp.zeros((D,), jnp.float32),
            "qkv_w": nrm((D, 3 * D)),
            "qkv_b": jnp.zeros((3 * D,), jnp.float32),
            "proj_w": nrm((D, D)),
            "proj_b": jnp.zeros((D,), jnp.float32),
            "ln2_g": jnp.ones((D,), jnp.float32),
            "ln2_b": jnp.zeros((D,), jnp.float32),
            "fc1_w": nrm((D, mlp_hidden)),
            "fc1_b": jnp.zeros((mlp_hidden,), jnp.float32),
            "fc2_w": nrm((mlp_hidden, D)),
            "fc2_b": jnp.zeros((D,), jnp.float32),
        })
    return params


# ----------------------------------------------------------------------------

if __name__ == "__main__":
    # Small synthetic config: 'vits16'-style patch size 16, tiny hidden dims.
    B, C, H, W = 2, 3, 32, 32          # NCHW image, like PyTorch
    PATCH = 16
    EMBED = 32                          # n_feats
    HEADS = 2
    DEPTH = 2
    MLP_HIDDEN = 4 * EMBED
    N_CLS = 2
    SEQ = 1 + (H // PATCH) * (W // PATCH)   # cls token + patches

    key = jax.random.PRNGKey(0)
    k_img, k_par = jax.random.split(key)
    img = jax.random.normal(k_img, (B, C, H, W), dtype=jnp.float32)
    params = init_params(
        k_par, in_chans=C, patch_size=PATCH, embed_dim=EMBED, depth=DEPTH,
        num_heads=HEADS, mlp_hidden=MLP_HIDDEN, n_cls=N_CLS, seq_len=SEQ)

    fwd = jax.jit(functools.partial(
        dino_classifier_forward, patch_size=PATCH, num_heads=HEADS))
    out = fwd(img, params)
    jax.block_until_ready(out)

    assert out["z_tokens"].shape == (B, EMBED, 1, 1)
    assert out["y_pixel"].shape == (B, N_CLS, 1, 1)
    print("KERNEL_OK")
</pallas_src>

<mosaic_0001>
module attributes {stable_mosaic.version = 11 : i64} {
  func.func @_matmul_bias_kernel(%arg0: i32, %arg1: memref<8x768xf32, #tpu.memory_space<vmem>>, %arg2: memref<768x32xbf16, #tpu.memory_space<vmem>>, %arg3: memref<1x32xf32, #tpu.memory_space<vmem>>, %arg4: memref<8x32xf32, #tpu.memory_space<vmem>>) attributes {dimension_semantics = [#tpu.dimension_semantics<parallel>], iteration_bounds = array<i64: 1>, scalar_prefetch = 0 : i64, scratch_operands = 0 : i64, tpu.core_type = #tpu.core_type<tc>, window_params = [{transform_indices = @transform_0, window_bounds = array<i64: 8, 768>}, {pipeline_mode = #tpu.pipeline_mode<synchronous>, transform_indices = @transform_1, window_bounds = array<i64: 768, 32>}, {pipeline_mode = #tpu.pipeline_mode<synchronous>, transform_indices = @transform_2, window_bounds = array<i64: 1, 32>}, {transform_indices = @transform_3, window_bounds = array<i64: 8, 32>}]} {
    %c0 = arith.constant 0 : index
    %c0_0 = arith.constant 0 : index
    %0 = vector.load %arg1[%c0, %c0_0] : memref<8x768xf32, #tpu.memory_space<vmem>>, vector<8x768xf32>
    %1 = arith.truncf %0 : vector<8x768xf32> to vector<8x768xbf16>
    %c0_1 = arith.constant 0 : index
    %c0_2 = arith.constant 0 : index
    %2 = vector.load %arg2[%c0_1, %c0_2] : memref<768x32xbf16, #tpu.memory_space<vmem>>, vector<768x32xbf16>
    %cst = arith.constant dense<0.000000e+00> : vector<8x32xf32>
    %3 = tpu.matmul %1, %2, %cst {dimension_numbers = #tpu.dot_dimension_numbers<[1], [0], [0], [1], [0, 0, 1, 1], [], []>} : vector<8x768xbf16>, vector<768x32xbf16>, vector<8x32xf32> -> vector<8x32xf32>
    %c0_3 = arith.constant 0 : index
    %c0_4 = arith.constant 0 : index
    %4 = vector.load %arg3[%c0_3, %c0_4] : memref<1x32xf32, #tpu.memory_space<vmem>>, vector<1x32xf32>
    %5 = vector.broadcast %4 : vector<1x32xf32> to vector<8x32xf32>
    %6 = arith.addf %3, %5 : vector<8x32xf32>
    %c0_5 = arith.constant 0 : index
    %c0_6 = arith.constant 0 : index
    %7 = vector.load %arg4[%c0_5, %c0_6] : memref<8x32xf32, #tpu.memory_space<vmem>>, vector<8x32xf32>
    tpu.vector_store %arg4[%c0_5, %c0_6], %6 {strides = array<i32>} : memref<8x32xf32, #tpu.memory_space<vmem>>, vector<8x32xf32>,
    return
  }
  func.func @transform_0(%arg0: i32) -> (i32, i32) {
    %c0_i32 = arith.constant 0 : i32
    %c0_i32_0 = arith.constant 0 : i32
    return %arg0, %c0_i32 : i32, i32
  }
  func.func @transform_1(%arg0: i32) -> (i32, i32) {
    %c0_i32 = arith.constant 0 : i32
    %c0_i32_0 = arith.constant 0 : i32
    %c0_i32_1 = arith.constant 0 : i32
    return %c0_i32, %c0_i32_0 : i32, i32
  }
  func.func @transform_2(%arg0: i32) -> (i32, i32) {
    %c0_i32 = arith.constant 0 : i32
    %c0_i32_0 = arith.constant 0 : i32
    %c0_i32_1 = arith.constant 0 : i32
    return %c0_i32, %c0_i32_0 : i32, i32
  }
  func.func @transform_3(%arg0: i32) -> (i32, i32) {
    %c0_i32 = arith.constant 0 : i32
    %c0_i32_0 = arith.constant 0 : i32
    return %arg0, %c0_i32 : i32, i32
  }
}

module attributes {stable_mosaic.version = 11 : i64} {
  func.func @_attn_block_kernel(%arg0: i32, %arg1: memref<1x5x32xf32, #tpu.memory_space<vmem>>, %arg2: memref<1x32xf32, #tpu.memory_space<vmem>>, %arg3: memref<1x32xf32, #tpu.memory_space<vmem>>, %arg4: memref<32x96xbf16, #tpu.memory_space<vmem>>, %arg5: memref<1x96xf32, #tpu.memory_space<vmem>>, %arg6: memref<2x16x32xbf16, #tpu.memory_space<vmem>>, %arg7: memref<1x32xf32, #tpu.memory_space<vmem>>, %arg8: memref<1x5x32xf32, #tpu.memory_space<vmem>>) attributes {dimension_semantics = [#tpu.dimension_semantics<parallel>], iteration_bounds = array<i64: 2>, scalar_prefetch = 0 : i64, scratch_operands = 0 : i64, tpu.core_type = #tpu.core_type<tc>, window_params = [{transform_indices = @transform_0, window_bounds = array<i64: 1, 5, 32>}, {pipeline_mode = #tpu.pipeline_mode<synchronous>, transform_indices = @transform_1, window_bounds = array<i64: 1, 32>}, {pipeline_mode = #tpu.pipeline_mode<synchronous>, transform_indices = @transform_2, window_bounds = array<i64: 1, 32>}, {pipeline_mode = #tpu.pipeline_mode<synchronous>, transform_indices = @transform_3, window_bounds = array<i64: 32, 96>}, {pipeline_mode = #tpu.pipeline_mode<synchronous>, transform_indices = @transform_4, window_bounds = array<i64: 1, 96>}, {pipeline_mode = #tpu.pipeline_mode<synchronous>, transform_indices = @transform_5, window_bounds = array<i64: 2, 16, 32>}, {pipeline_mode = #tpu.pipeline_mode<synchronous>, transform_indices = @transform_6, window_bounds = array<i64: 1, 32>}, {transform_indices = @transform_7, window_bounds = array<i64: 1, 5, 32>}]} {
    %c0 = arith.constant 0 : index
    %c0_0 = arith.constant 0 : index
    %c0_1 = arith.constant 0 : index
    %0 = vector.load %arg1[%c0, %c0_0, %c0_1] : memref<1x5x32xf32, #tpu.memory_space<vmem>>, vector<1x5x32xf32>
    %1 = vector.shape_cast %0 : vector<1x5x32xf32> to vector<5x32xf32>
    %cst = arith.constant dense<0.000000e+00> : vector<5xf32>
    %2 = vector.multi_reduction <add>, %1, %cst [1] : vector<5x32xf32> to vector<5xf32>
    %3 = vector.shape_cast %2 : vector<5xf32> to vector<5x1xf32>
    %cst_2 = arith.constant 3.200000e+01 : f32
    %4 = vector.broadcast %cst_2 : f32 to vector<5x1xf32>
    %5 = arith.divf %3, %4 : vector<5x1xf32>
    %6 = vector.broadcast %5 : vector<5x1xf32> to vector<5x32xf32>
    %7 = arith.subf %1, %6 : vector<5x32xf32>
    %8 = arith.mulf %7, %7 : vector<5x32xf32>
    %cst_3 = arith.constant dense<0.000000e+00> : vector<5xf32>
    %9 = vector.multi_reduction <add>, %8, %cst_3 [1] : vector<5x32xf32> to vector<5xf32>
    %10 = vector.shape_cast %9 : vector<5xf32> to vector<5x1xf32>
    %cst_4 = arith.constant 3.200000e+01 : f32
    %11 = vector.broadcast %cst_4 : f32 to vector<5x1xf32>
    %12 = arith.divf %10, %11 : vector<5x1xf32>
    %13 = vector.broadcast %5 : vector<5x1xf32> to vector<5x32xf32>
    %14 = arith.subf %1, %13 : vector<5x32xf32>
    %cst_5 = arith.constant 9.99999997E-7 : f32
    %15 = vector.broadcast %cst_5 : f32 to vector<5x1xf32>
    %16 = arith.addf %12, %15 : vector<5x1xf32>
    %17 = math.rsqrt %16 : vector<5x1xf32>
    %18 = vector.broadcast %17 : vector<5x1xf32> to vector<5x32xf32>
    %19 = arith.mulf %14, %18 : vector<5x32xf32>
    %c0_6 = arith.constant 0 : index
    %c0_7 = arith.constant 0 : index
    %20 = vector.load %arg2[%c0_6, %c0_7] : memref<1x32xf32, #tpu.memory_space<vmem>>, vector<1x32xf32>
    %21 = vector.broadcast %20 : vector<1x32xf32> to vector<5x32xf32>
    %22 = arith.mulf %19, %21 : vector<5x32xf32>
    %c0_8 = arith.constant 0 : index
    %c0_9 = arith.constant 0 : index
    %23 = vector.load %arg3[%c0_8, %c0_9] : memref<1x32xf32, #tpu.memory_space<vmem>>, vector<1x32xf32>
    %24 = vector.broadcast %23 : vector<1x32xf32> to vector<5x32xf32>
    %25 = arith.addf %22, %24 : vector<5x32xf32>
    %26 = arith.truncf %25 : vector<5x32xf32> to vector<5x32xbf16>
    %c0_10 = arith.constant 0 : index
    %c0_11 = arith.constant 0 : index
    %27 = vector.load %arg4[%c0_10, %c0_11] : memref<32x96xbf16, #tpu.memory_space<vmem>>, vector<32x96xbf16>
    %cst_12 = arith.constant dense<0.000000e+00> : vector<5x96xf32>
    %28 = tpu.matmul %26, %27, %cst_12 {dimension_numbers = #tpu.dot_dimension_numbers<[1], [0], [0], [1], [0, 0, 1, 1], [], []>} : vector<5x32xbf16>, vector<32x96xbf16>, vector<5x96xf32> -> vector<5x96xf32>
    %c0_13 = arith.constant 0 : index
    %c0_14 = arith.constant 0 : index
    %29 = vector.load %arg5[%c0_13, %c0_14] : memref<1x96xf32, #tpu.memory_space<vmem>>, vector<1x96xf32>
    %30 = vector.broadcast %29 : vector<1x96xf32> to vector<5x96xf32>
    %31 = arith.addf %28, %30 : vector<5x96xf32>
    %c0_15 = arith.constant 0 : index
    %c0_16 = arith.constant 0 : index
    %32 = vector.load %arg7[%c0_15, %c0_16] : memref<1x32xf32, #tpu.memory_space<vmem>>, vector<1x32xf32>
    %33 = vector.broadcast %32 : vector<1x32xf32> to vector<5x32xf32>
    %34 = arith.addf %1, %33 : vector<5x32xf32>
    %35 = vector.extract_strided_slice %31 {offsets = [0, 0], sizes = [5, 16], strides = [1, 1]} : vector<5x96xf32> to vector<5x16xf32>
    %36 = vector.extract_strided_slice %31 {offsets = [0, 32], sizes = [5, 16], strides = [1, 1]} : vector<5x96xf32> to vector<5x16xf32>
    %37 = vector.extract_strided_slice %31 {offsets = [0, 64], sizes = [5, 16], strides = [1, 1]} : vector<5x96xf32> to vector<5x16xf32>
    %38 = arith.truncf %35 : vector<5x16xf32> to vector<5x16xbf16>
    %39 = arith.truncf %36 : vector<5x16xf32> to vector<5x16xbf16>
    %cst_17 = arith.constant dense<0.000000e+00> : vector<5x5xf32>
    %40 = tpu.matmul %38, %39, %cst_17 {dimension_numbers = #tpu.dot_dimension_numbers<[1], [1], [0], [0], [0, 0, 1, 0], [], []>} : vector<5x16xbf16>, vector<5x16xbf16>, vector<5x5xf32> -> vector<5x5xf32>
    %cst_18 = arith.constant 2.500000e-01 : f32
    %41 = vector.broadcast %cst_18 : f32 to vector<5x5xf32>
    %42 = arith.mulf %40, %41 : vector<5x5xf32>
    %cst_19 = arith.constant dense<0xFF800000> : vector<5xf32>
    %43 = vector.multi_reduction <maximumf>, %42, %cst_19 [1] : vector<5x5xf32> to vector<5xf32>
    %44 = vector.shape_cast %43 : vector<5xf32> to vector<5x1xf32>
    %45 = vector.broadcast %44 : vector<5x1xf32> to vector<5x5xf32>
    %46 = arith.subf %42, %45 : vector<5x5xf32>
    %47 = math.exp %46 : vector<5x5xf32>
    %cst_20 = arith.constant dense<0.000000e+00> : vector<5xf32>
    %48 = vector.multi_reduction <add>, %47, %cst_20 [1] : vector<5x5xf32> to vector<5xf32>
    %49 = vector.shape_cast %48 : vector<5xf32> to vector<5x1xf32>
    %50 = tpu.reciprocal %49 {approx = true} : vector<5x1xf32> -> vector<5x1xf32>
    %51 = arith.truncf %47 : vector<5x5xf32> to vector<5x5xbf16>
    %52 = arith.truncf %37 : vector<5x16xf32> to vector<5x16xbf16>
    %cst_21 = arith.constant dense<0.000000e+00> : vector<5x16xf32>
    %53 = tpu.matmul %51, %52, %cst_21 {dimension_numbers = #tpu.dot_dimension_numbers<[1], [0], [0], [1], [0, 0, 1, 1], [], []>} : vector<5x5xbf16>, vector<5x16xbf16>, vector<5x16xf32> -> vector<5x16xf32>
    %54 = vector.broadcast %50 : vector<5x1xf32> to vector<5x16xf32>
    %55 = arith.mulf %53, %54 : vector<5x16xf32>
    %56 = arith.truncf %55 : vector<5x16xf32> to vector<5x16xbf16>
    %c0_22 = arith.constant 0 : index
    %c0_23 = arith.constant 0 : index
    %c0_24 = arith.constant 0 : index
    %57 = vector.load %arg6[%c0_22, %c0_23, %c0_24] : memref<2x16x32xbf16, #tpu.memory_space<vmem>>, vector<1x16x32xbf16>
    %58 = vector.shape_cast %57 : vector<1x16x32xbf16> to vector<16x32xbf16>
    %cst_25 = arith.constant dense<0.000000e+00> : vector<5x32xf32>
    %59 = tpu.matmul %56, %58, %cst_25 {dimension_numbers = #tpu.dot_dimension_numbers<[1], [0], [0], [1], [0, 0, 1, 1], [], []>} : vector<5x16xbf16>, vector<16x32xbf16>, vector<5x32xf32> -> vector<5x32xf32>
    %60 = arith.addf %34, %59 : vector<5x32xf32>
    %61 = vector.extract_strided_slice %31 {offsets = [0, 16], sizes = [5, 16], strides = [1, 1]} : vector<5x96xf32> to vector<5x16xf32>
    %62 = vector.extract_strided_slice %31 {offsets = [0, 48], sizes = [5, 16], strides = [1, 1]} : vector<5x96xf32> to vector<5x16xf32>
    %63 = vector.extract_strided_slice %31 {offsets = [0, 80], sizes = [5, 16], strides = [1, 1]} : vector<5x96xf32> to vector<5x16xf32>
    %64 = arith.truncf %61 : vector<5x16xf32> to vector<5x16xbf16>
    %65 = arith.truncf %62 : vector<5x16xf32> to vector<5x16xbf16>
    %cst_26 = arith.constant dense<0.000000e+00> : vector<5x5xf32>
    %66 = tpu.matmul %64, %65, %cst_26 {dimension_numbers = #tpu.dot_dimension_numbers<[1], [1], [0], [0], [0, 0, 1, 0], [], []>} : vector<5x16xbf16>, vector<5x16xbf16>, vector<5x5xf32> -> vector<5x5xf32>
    %cst_27 = arith.constant 2.500000e-01 : f32
    %67 = vector.broadcast %cst_27 : f32 to vector<5x5xf32>
    %68 = arith.mulf %66, %67 : vector<5x5xf32>
    %cst_28 = arith.constant dense<0xFF800000> : vector<5xf32>
    %69 = vector.multi_reduction <maximumf>, %68, %cst_28 [1] : vector<5x5xf32> to vector<5xf32>
    %70 = vector.shape_cast %69 : vector<5xf32> to vector<5x1xf32>
    %71 = vector.broadcast %70 : vector<5x1xf32> to vector<5x5xf32>
    %72 = arith.subf %68, %71 : vector<5x5xf32>
    %73 = math.exp %72 : vector<5x5xf32>
    %cst_29 = arith.constant dense<0.000000e+00> : vector<5xf32>
    %74 = vector.multi_reduction <add>, %73, %cst_29 [1] : vector<5x5xf32> to vector<5xf32>
    %75 = vector.shape_cast %74 : vector<5xf32> to vector<5x1xf32>
    %76 = tpu.reciprocal %75 {approx = true} : vector<5x1xf32> -> vector<5x1xf32>
    %77 = arith.truncf %73 : vector<5x5xf32> to vector<5x5xbf16>
    %78 = arith.truncf %63 : vector<5x16xf32> to vector<5x16xbf16>
    %cst_30 = arith.constant dense<0.000000e+00> : vector<5x16xf32>
    %79 = tpu.matmul %77, %78, %cst_30 {dimension_numbers = #tpu.dot_dimension_numbers<[1], [0], [0], [1], [0, 0, 1, 1], [], []>} : vector<5x5xbf16>, vector<5x16xbf16>, vector<5x16xf32> -> vector<5x16xf32>
    %80 = vector.broadcast %76 : vector<5x1xf32> to vector<5x16xf32>
    %81 = arith.mulf %79, %80 : vector<5x16xf32>
    %82 = arith.truncf %81 : vector<5x16xf32> to vector<5x16xbf16>
    %c1 = arith.constant 1 : index
    %c0_31 = arith.constant 0 : index
    %c0_32 = arith.constant 0 : index
    %83 = vector.load %arg6[%c1, %c0_31, %c0_32] : memref<2x16x32xbf16, #tpu.memory_space<vmem>>, vector<1x16x32xbf16>
    %84 = vector.shape_cast %83 : vector<1x16x32xbf16> to vector<16x32xbf16>
    %cst_33 = arith.constant dense<0.000000e+00> : vector<5x32xf32>
    %85 = tpu.matmul %82, %84, %cst_33 {dimension_numbers = #tpu.dot_dimension_numbers<[1], [0], [0], [1], [0, 0, 1, 1], [], []>} : vector<5x16xbf16>, vector<16x32xbf16>, vector<5x32xf32> -> vector<5x32xf32>
    %86 = arith.addf %60, %85 : vector<5x32xf32>
    %c0_34 = arith.constant 0 : index
    %c0_35 = arith.constant 0 : index
    %c0_36 = arith.constant 0 : index
    %87 = vector.load %arg8[%c0_34, %c0_35, %c0_36] : memref<1x5x32xf32, #tpu.memory_space<vmem>>, vector<1x5x32xf32>
    %88 = vector.shape_cast %87 : vector<1x5x32xf32> to vector<5x32xf32>
    %89 = vector.shape_cast %86 : vector<5x32xf32> to vector<1x5x32xf32>
    tpu.vector_store %arg8[%c0_34, %c0_35, %c0_36], %89 {strides = array<i32>} : memref<1x5x32xf32, #tpu.memory_space<vmem>>, vector<1x5x32xf32>,
    return
  }
  func.func @transform_0(%arg0: i32) -> (i32, i32, i32) {
    %c0_i32 = arith.constant 0 : i32
    %c0_i32_0 = arith.constant 0 : i32
    %c0_i32_1 = arith.constant 0 : i32
    return %arg0, %c0_i32, %c0_i32_0 : i32, i32, i32
  }
  func.func @transform_1(%arg0: i32) -> (i32, i32) {
    %c0_i32 = arith.constant 0 : i32
    %c0_i32_0 = arith.constant 0 : i32
    %c0_i32_1 = arith.constant 0 : i32
    return %c0_i32, %c0_i32_0 : i32, i32
  }
  func.func @transform_2(%arg0: i32) -> (i32, i32) {
    %c0_i32 = arith.constant 0 : i32
    %c0_i32_0 = arith.constant 0 : i32
    %c0_i32_1 = arith.constant 0 : i32
    return %c0_i32, %c0_i32_0 : i32, i32
  }
  func.func @transform_3(%arg0: i32) -> (i32, i32) {
    %c0_i32 = arith.constant 0 : i32
    %c0_i32_0 = arith.constant 0 : i32
    %c0_i32_1 = arith.constant 0 : i32
    return %c0_i32, %c0_i32_0 : i32, i32
  }
  func.func @transform_4(%arg0: i32) -> (i32, i32) {
    %c0_i32 = arith.constant 0 : i32
    %c0_i32_0 = arith.constant 0 : i32
    %c0_i32_1 = arith.constant 0 : i32
    return %c0_i32, %c0_i32_0 : i32, i32
  }
  func.func @transform_5(%arg0: i32) -> (i32, i32, i32) {
    %c0_i32 = arith.constant 0 : i32
    %c0_i32_0 = arith.constant 0 : i32
    %c0_i32_1 = arith.constant 0 : i32
    %c0_i32_2 = arith.constant 0 : i32
    return %c0_i32, %c0_i32_0, %c0_i32_1 : i32, i32, i32
  }
  func.func @transform_6(%arg0: i32) -> (i32, i32) {
    %c0_i32 = arith.constant 0 : i32
    %c0_i32_0 = arith.constant 0 : i32
    %c0_i32_1 = arith.constant 0 : i32
    return %c0_i32, %c0_i32_0 : i32, i32
  }
  func.func @transform_7(%arg0: i32) -> (i32, i32, i32) {
    %c0_i32 = arith.constant 0 : i32
    %c0_i32_0 = arith.constant 0 : i32
    %c0_i32_1 = arith.constant 0 : i32
    return %arg0, %c0_i32, %c0_i32_0 : i32, i32, i32
  }
}

module attributes {stable_mosaic.version = 11 : i64} {
  func.func @_mlp_block_kernel(%arg0: i32, %arg1: memref<10x32xf32, #tpu.memory_space<vmem>>, %arg2: memref<1x32xf32, #tpu.memory_space<vmem>>, %arg3: memref<1x32xf32, #tpu.memory_space<vmem>>, %arg4: memref<32x128xbf16, #tpu.memory_space<vmem>>, %arg5: memref<1x128xf32, #tpu.memory_space<vmem>>, %arg6: memref<128x32xbf16, #tpu.memory_space<vmem>>, %arg7: memref<1x32xf32, #tpu.memory_space<vmem>>, %arg8: memref<10x32xf32, #tpu.memory_space<vmem>>) attributes {dimension_semantics = [#tpu.dimension_semantics<parallel>], iteration_bounds = array<i64: 1>, scalar_prefetch = 0 : i64, scratch_operands = 0 : i64, tpu.core_type = #tpu.core_type<tc>, window_params = [{transform_indices = @transform_0, window_bounds = array<i64: 10, 32>}, {pipeline_mode = #tpu.pipeline_mode<synchronous>, transform_indices = @transform_1, window_bounds = array<i64: 1, 32>}, {pipeline_mode = #tpu.pipeline_mode<synchronous>, transform_indices = @transform_2, window_bounds = array<i64: 1, 32>}, {pipeline_mode = #tpu.pipeline_mode<synchronous>, transform_indices = @transform_3, window_bounds = array<i64: 32, 128>}, {pipeline_mode = #tpu.pipeline_mode<synchronous>, transform_indices = @transform_4, window_bounds = array<i64: 1, 128>}, {pipeline_mode = #tpu.pipeline_mode<synchronous>, transform_indices = @transform_5, window_bounds = array<i64: 128, 32>}, {pipeline_mode = #tpu.pipeline_mode<synchronous>, transform_indices = @transform_6, window_bounds = array<i64: 1, 32>}, {transform_indices = @transform_7, window_bounds = array<i64: 10, 32>}]} {
    %c0 = arith.constant 0 : index
    %c0_0 = arith.constant 0 : index
    %0 = vector.load %arg1[%c0, %c0_0] : memref<10x32xf32, #tpu.memory_space<vmem>>, vector<10x32xf32>
    %cst = arith.constant dense<0.000000e+00> : vector<10xf32>
    %1 = vector.multi_reduction <add>, %0, %cst [1] : vector<10x32xf32> to vector<10xf32>
    %2 = vector.shape_cast %1 : vector<10xf32> to vector<10x1xf32>
    %cst_1 = arith.constant 3.200000e+01 : f32
    %3 = vector.broadcast %cst_1 : f32 to vector<10x1xf32>
    %4 = arith.divf %2, %3 : vector<10x1xf32>
    %5 = vector.broadcast %4 : vector<10x1xf32> to vector<10x32xf32>
    %6 = arith.subf %0, %5 : vector<10x32xf32>
    %7 = arith.mulf %6, %6 : vector<10x32xf32>
    %cst_2 = arith.constant dense<0.000000e+00> : vector<10xf32>
    %8 = vector.multi_reduction <add>, %7, %cst_2 [1] : vector<10x32xf32> to vector<10xf32>
    %9 = vector.shape_cast %8 : vector<10xf32> to vector<10x1xf32>
    %cst_3 = arith.constant 3.200000e+01 : f32
    %10 = vector.broadcast %cst_3 : f32 to vector<10x1xf32>
    %11 = arith.divf %9, %10 : vector<10x1xf32>
    %12 = vector.broadcast %4 : vector<10x1xf32> to vector<10x32xf32>
    %13 = arith.subf %0, %12 : vector<10x32xf32>
    %cst_4 = arith.constant 9.99999997E-7 : f32
    %14 = vector.broadcast %cst_4 : f32 to vector<10x1xf32>
    %15 = arith.addf %11, %14 : vector<10x1xf32>
    %16 = math.rsqrt %15 : vector<10x1xf32>
    %17 = vector.broadcast %16 : vector<10x1xf32> to vector<10x32xf32>
    %18 = arith.mulf %13, %17 : vector<10x32xf32>
    %c0_5 = arith.constant 0 : index
    %c0_6 = arith.constant 0 : index
    %19 = vector.load %arg2[%c0_5, %c0_6] : memref<1x32xf32, #tpu.memory_space<vmem>>, vector<1x32xf32>
    %20 = vector.broadcast %19 : vector<1x32xf32> to vector<10x32xf32>
    %21 = arith.mulf %18, %20 : vector<10x32xf32>
    %c0_7 = arith.constant 0 : index
    %c0_8 = arith.constant 0 : index
    %22 = vector.load %arg3[%c0_7, %c0_8] : memref<1x32xf32, #tpu.memory_space<vmem>>, vector<1x32xf32>
    %23 = vector.broadcast %22 : vector<1x32xf32> to vector<10x32xf32>
    %24 = arith.addf %21, %23 : vector<10x32xf32>
    %25 = arith.truncf %24 : vector<10x32xf32> to vector<10x32xbf16>
    %c0_9 = arith.constant 0 : index
    %c0_10 = arith.constant 0 : index
    %26 = vector.load %arg4[%c0_9, %c0_10] : memref<32x128xbf16, #tpu.memory_space<vmem>>, vector<32x128xbf16>
    %cst_11 = arith.constant dense<0.000000e+00> : vector<10x128xf32>
    %27 = tpu.matmul %25, %26, %cst_11 {dimension_numbers = #tpu.dot_dimension_numbers<[1], [0], [0], [1], [0, 0, 1, 1], [], []>} : vector<10x32xbf16>, vector<32x128xbf16>, vector<10x128xf32> -> vector<10x128xf32>
    %c0_12 = arith.constant 0 : index
    %c0_13 = arith.constant 0 : index
    %28 = vector.load %arg5[%c0_12, %c0_13] : memref<1x128xf32, #tpu.memory_space<vmem>>, vector<1x128xf32>
    %29 = vector.broadcast %28 : vector<1x128xf32> to vector<10x128xf32>
    %30 = arith.addf %27, %29 : vector<10x128xf32>
    %31 = arith.mulf %30, %30 : vector<10x128xf32>
    %32 = arith.mulf %30, %31 : vector<10x128xf32>
    %cst_14 = arith.constant 4.471500e-02 : f32
    %33 = vector.broadcast %cst_14 : f32 to vector<10x128xf32>
    %34 = arith.mulf %33, %32 : vector<10x128xf32>
    %35 = arith.addf %30, %34 : vector<10x128xf32>
    %cst_15 = arith.constant 0.797884583 : f32
    %36 = vector.broadcast %cst_15 : f32 to vector<10x128xf32>
    %37 = arith.mulf %36, %35 : vector<10x128xf32>
    %38 = math.tanh %37 : vector<10x128xf32>
    %cst_16 = arith.constant 1.000000e+00 : f32
    %39 = vector.broadcast %cst_16 : f32 to vector<10x128xf32>
    %40 = arith.addf %39, %38 : vector<10x128xf32>
    %cst_17 = arith.constant 5.000000e-01 : f32
    %41 = vector.broadcast %cst_17 : f32 to vector<10x128xf32>
    %42 = arith.mulf %41, %40 : vector<10x128xf32>
    %43 = arith.mulf %30, %42 : vector<10x128xf32>
    %44 = arith.truncf %43 : vector<10x128xf32> to vector<10x128xbf16>
    %c0_18 = arith.constant 0 : index
    %c0_19 = arith.constant 0 : index
    %45 = vector.load %arg6[%c0_18, %c0_19] : memref<128x32xbf16, #tpu.memory_space<vmem>>, vector<128x32xbf16>
    %cst_20 = arith.constant dense<0.000000e+00> : vector<10x32xf32>
    %46 = tpu.matmul %44, %45, %cst_20 {dimension_numbers = #tpu.dot_dimension_numbers<[1], [0], [0], [1], [0, 0, 1, 1], [], []>} : vector<10x128xbf16>, vector<128x32xbf16>, vector<10x32xf32> -> vector<10x32xf32>
    %c0_21 = arith.constant 0 : index
    %c0_22 = arith.constant 0 : index
    %47 = vector.load %arg7[%c0_21, %c0_22] : memref<1x32xf32, #tpu.memory_space<vmem>>, vector<1x32xf32>
    %48 = vector.broadcast %47 : vector<1x32xf32> to vector<10x32xf32>
    %49 = arith.addf %46, %48 : vector<10x32xf32>
    %50 = arith.addf %0, %49 : vector<10x32xf32>
    %c0_23 = arith.constant 0 : index
    %c0_24 = arith.constant 0 : index
    %51 = vector.load %arg8[%c0_23, %c0_24] : memref<10x32xf32, #tpu.memory_space<vmem>>, vector<10x32xf32>
    tpu.vector_store %arg8[%c0_23, %c0_24], %50 {strides = array<i32>} : memref<10x32xf32, #tpu.memory_space<vmem>>, vector<10x32xf32>,
    return
  }
  func.func @transform_0(%arg0: i32) -> (i32, i32) {
    %c0_i32 = arith.constant 0 : i32
    %c0_i32_0 = arith.constant 0 : i32
    return %arg0, %c0_i32 : i32, i32
  }
  func.func @transform_1(%arg0: i32) -> (i32, i32) {
    %c0_i32 = arith.constant 0 : i32
    %c0_i32_0 = arith.constant 0 : i32
    %c0_i32_1 = arith.constant 0 : i32
    return %c0_i32, %c0_i32_0 : i32, i32
  }
  func.func @transform_2(%arg0: i32) -> (i32, i32) {
    %c0_i32 = arith.constant 0 : i32
    %c0_i32_0 = arith.constant 0 : i32
    %c0_i32_1 = arith.constant 0 : i32
    return %c0_i32, %c0_i32_0 : i32, i32
  }
  func.func @transform_3(%arg0: i32) -> (i32, i32) {
    %c0_i32 = arith.constant 0 : i32
    %c0_i32_0 = arith.constant 0 : i32
    %c0_i32_1 = arith.constant 0 : i32
    return %c0_i32, %c0_i32_0 : i32, i32
  }
  func.func @transform_4(%arg0: i32) -> (i32, i32) {
    %c0_i32 = arith.constant 0 : i32
    %c0_i32_0 = arith.constant 0 : i32
    %c0_i32_1 = arith.constant 0 : i32
    return %c0_i32, %c0_i32_0 : i32, i32
  }
  func.func @transform_5(%arg0: i32) -> (i32, i32) {
    %c0_i32 = arith.constant 0 : i32
    %c0_i32_0 = arith.constant 0 : i32
    %c0_i32_1 = arith.constant 0 : i32
    return %c0_i32, %c0_i32_0 : i32, i32
  }
  func.func @transform_6(%arg0: i32) -> (i32, i32) {
    %c0_i32 = arith.constant 0 : i32
    %c0_i32_0 = arith.constant 0 : i32
    %c0_i32_1 = arith.constant 0 : i32
    return %c0_i32, %c0_i32_0 : i32, i32
  }
  func.func @transform_7(%arg0: i32) -> (i32, i32) {
    %c0_i32 = arith.constant 0 : i32
    %c0_i32_0 = arith.constant 0 : i32
    return %arg0, %c0_i32 : i32, i32
  }
}

module attributes {stable_mosaic.version = 11 : i64} {
  func.func @_head_kernel(%arg0: i32, %arg1: memref<2x32xf32, #tpu.memory_space<vmem>>, %arg2: memref<1x32xf32, #tpu.memory_space<vmem>>, %arg3: memref<1x32xf32, #tpu.memory_space<vmem>>, %arg4: memref<32x32xbf16, #tpu.memory_space<vmem>>, %arg5: memref<1x32xf32, #tpu.memory_space<vmem>>, %arg6: memref<32x2xbf16, #tpu.memory_space<vmem>>, %arg7: memref<2x32xf32, #tpu.memory_space<vmem>>, %arg8: memref<2x2xf32, #tpu.memory_space<vmem>>) attributes {dimension_semantics = [#tpu.dimension_semantics<parallel>], iteration_bounds = array<i64: 1>, scalar_prefetch = 0 : i64, scratch_operands = 0 : i64, tpu.core_type = #tpu.core_type<tc>, window_params = [{transform_indices = @transform_0, window_bounds = array<i64: 2, 32>}, {pipeline_mode = #tpu.pipeline_mode<synchronous>, transform_indices = @transform_1, window_bounds = array<i64: 1, 32>}, {pipeline_mode = #tpu.pipeline_mode<synchronous>, transform_indices = @transform_2, window_bounds = array<i64: 1, 32>}, {pipeline_mode = #tpu.pipeline_mode<synchronous>, transform_indices = @transform_3, window_bounds = array<i64: 32, 32>}, {pipeline_mode = #tpu.pipeline_mode<synchronous>, transform_indices = @transform_4, window_bounds = array<i64: 1, 32>}, {pipeline_mode = #tpu.pipeline_mode<synchronous>, transform_indices = @transform_5, window_bounds = array<i64: 32, 2>}, {transform_indices = @transform_6, window_bounds = array<i64: 2, 32>}, {transform_indices = @transform_7, window_bounds = array<i64: 2, 2>}]} {
    %c0 = arith.constant 0 : index
    %c0_0 = arith.constant 0 : index
    %0 = vector.load %arg1[%c0, %c0_0] : memref<2x32xf32, #tpu.memory_space<vmem>>, vector<2x32xf32>
    %cst = arith.constant dense<0.000000e+00> : vector<2xf32>
    %1 = vector.multi_reduction <add>, %0, %cst [1] : vector<2x32xf32> to vector<2xf32>
    %2 = vector.shape_cast %1 : vector<2xf32> to vector<2x1xf32>
    %cst_1 = arith.constant 3.200000e+01 : f32
    %3 = vector.broadcast %cst_1 : f32 to vector<2x1xf32>
    %4 = arith.divf %2, %3 : vector<2x1xf32>
    %5 = vector.broadcast %4 : vector<2x1xf32> to vector<2x32xf32>
    %6 = arith.subf %0, %5 : vector<2x32xf32>
    %7 = arith.mulf %6, %6 : vector<2x32xf32>
    %cst_2 = arith.constant dense<0.000000e+00> : vector<2xf32>
    %8 = vector.multi_reduction <add>, %7, %cst_2 [1] : vector<2x32xf32> to vector<2xf32>
    %9 = vector.shape_cast %8 : vector<2xf32> to vector<2x1xf32>
    %cst_3 = arith.constant 3.200000e+01 : f32
    %10 = vector.broadcast %cst_3 : f32 to vector<2x1xf32>
    %11 = arith.divf %9, %10 : vector<2x1xf32>
    %12 = vector.broadcast %4 : vector<2x1xf32> to vector<2x32xf32>
    %13 = arith.subf %0, %12 : vector<2x32xf32>
    %cst_4 = arith.constant 9.99999997E-7 : f32
    %14 = vector.broadcast %cst_4 : f32 to vector<2x1xf32>
    %15 = arith.addf %11, %14 : vector<2x1xf32>
    %16 = math.rsqrt %15 : vector<2x1xf32>
    %17 = vector.broadcast %16 : vector<2x1xf32> to vector<2x32xf32>
    %18 = arith.mulf %13, %17 : vector<2x32xf32>
    %c0_5 = arith.constant 0 : index
    %c0_6 = arith.constant 0 : index
    %19 = vector.load %arg2[%c0_5, %c0_6] : memref<1x32xf32, #tpu.memory_space<vmem>>, vector<1x32xf32>
    %20 = vector.broadcast %19 : vector<1x32xf32> to vector<2x32xf32>
    %21 = arith.mulf %18, %20 : vector<2x32xf32>
    %c0_7 = arith.constant 0 : index
    %c0_8 = arith.constant 0 : index
    %22 = vector.load %arg3[%c0_7, %c0_8] : memref<1x32xf32, #tpu.memory_space<vmem>>, vector<1x32xf32>
    %23 = vector.broadcast %22 : vector<1x32xf32> to vector<2x32xf32>
    %24 = arith.addf %21, %23 : vector<2x32xf32>
    %c0_9 = arith.constant 0 : index
    %c0_10 = arith.constant 0 : index
    %25 = vector.load %arg7[%c0_9, %c0_10] : memref<2x32xf32, #tpu.memory_space<vmem>>, vector<2x32xf32>
    tpu.vector_store %arg7[%c0_9, %c0_10], %24 {strides = array<i32>} : memref<2x32xf32, #tpu.memory_space<vmem>>, vector<2x32xf32>,
    %26 = arith.truncf %24 : vector<2x32xf32> to vector<2x32xbf16>
    %c0_11 = arith.constant 0 : index
    %c0_12 = arith.constant 0 : index
    %27 = vector.load %arg4[%c0_11, %c0_12] : memref<32x32xbf16, #tpu.memory_space<vmem>>, vector<32x32xbf16>
    %cst_13 = arith.constant dense<0.000000e+00> : vector<2x32xf32>
    %28 = tpu.matmul %26, %27, %cst_13 {dimension_numbers = #tpu.dot_dimension_numbers<[1], [0], [0], [1], [0, 0, 1, 1], [], []>} : vector<2x32xbf16>, vector<32x32xbf16>, vector<2x32xf32> -> vector<2x32xf32>
    %c0_14 = arith.constant 0 : index
    %c0_15 = arith.constant 0 : index
    %29 = vector.load %arg5[%c0_14, %c0_15] : memref<1x32xf32, #tpu.memory_space<vmem>>, vector<1x32xf32>
    %30 = vector.broadcast %29 : vector<1x32xf32> to vector<2x32xf32>
    %31 = arith.addf %28, %30 : vector<2x32xf32>
    %cst_16 = arith.constant 0.000000e+00 : f32
    %32 = vector.broadcast %cst_16 : f32 to vector<2x32xf32>
    %33 = arith.maximumf %31, %32 : vector<2x32xf32>
    %34 = arith.truncf %33 : vector<2x32xf32> to vector<2x32xbf16>
    %c0_17 = arith.constant 0 : index
    %c0_18 = arith.constant 0 : index
    %35 = vector.load %arg6[%c0_17, %c0_18] : memref<32x2xbf16, #tpu.memory_space<vmem>>, vector<32x2xbf16>
    %cst_19 = arith.constant dense<0.000000e+00> : vector<2x2xf32>
    %36 = tpu.matmul %34, %35, %cst_19 {dimension_numbers = #tpu.dot_dimension_numbers<[1], [0], [0], [1], [0, 0, 1, 1], [], []>} : vector<2x32xbf16>, vector<32x2xbf16>, vector<2x2xf32> -> vector<2x2xf32>
    %c0_20 = arith.constant 0 : index
    %c0_21 = arith.constant 0 : index
    %37 = vector.load %arg8[%c0_20, %c0_21] : memref<2x2xf32, #tpu.memory_space<vmem>>, vector<2x2xf32>
    tpu.vector_store %arg8[%c0_20, %c0_21], %36 {strides = array<i32>} : memref<2x2xf32, #tpu.memory_space<vmem>>, vector<2x2xf32>,
    return
  }
  func.func @transform_0(%arg0: i32) -> (i32, i32) {
    %c0_i32 = arith.constant 0 : i32
    %c0_i32_0 = arith.constant 0 : i32
    return %arg0, %c0_i32 : i32, i32
  }
  func.func @transform_1(%arg0: i32) -> (i32, i32) {
    %c0_i32 = arith.constant 0 : i32
    %c0_i32_0 = arith.constant 0 : i32
    %c0_i32_1 = arith.constant 0 : i32
    return %c0_i32, %c0_i32_0 : i32, i32
  }
  func.func @transform_2(%arg0: i32) -> (i32, i32) {
    %c0_i32 = arith.constant 0 : i32
    %c0_i32_0 = arith.constant 0 : i32
    %c0_i32_1 = arith.constant 0 : i32
    return %c0_i32, %c0_i32_0 : i32, i32
  }
  func.func @transform_3(%arg0: i32) -> (i32, i32) {
    %c0_i32 = arith.constant 0 : i32
    %c0_i32_0 = arith.constant 0 : i32
    %c0_i32_1 = arith.constant 0 : i32
    return %c0_i32, %c0_i32_0 : i32, i32
  }
  func.func @transform_4(%arg0: i32) -> (i32, i32) {
    %c0_i32 = arith.constant 0 : i32
    %c0_i32_0 = arith.constant 0 : i32
    %c0_i32_1 = arith.constant 0 : i32
    return %c0_i32, %c0_i32_0 : i32, i32
  }
  func.func @transform_5(%arg0: i32) -> (i32, i32) {
    %c0_i32 = arith.constant 0 : i32
    %c0_i32_0 = arith.constant 0 : i32
    %c0_i32_1 = arith.constant 0 : i32
    return %c0_i32, %c0_i32_0 : i32, i32
  }
  func.func @transform_6(%arg0: i32) -> (i32, i32) {
    %c0_i32 = arith.constant 0 : i32
    %c0_i32_0 = arith.constant 0 : i32
    return %arg0, %c0_i32 : i32, i32
  }
  func.func @transform_7(%arg0: i32) -> (i32, i32) {
    %c0_i32 = arith.constant 0 : i32
    %c0_i32_0 = arith.constant 0 : i32
    return %arg0, %c0_i32 : i32, i32
  }
}

</mosaic_0001>

<bundles_post_ra>
// kernel: dino_classifier_forward.11
= control target key start
LH: loop header
LB: loop body
LE: loop exit
PB: predicated region body
PF: predicated region fallthrough
CT: control target
= control target key end

     0   :  { %13 = vsyncpa [#allocation3], 0  ;;  %vm29_vm0 = vcmask 254976   ;;  %s406_s0 = inlined_call_operand.vmem [shape: f32[2,32], index: 0, kind: input, shape index: {}]   ;;  %s407_s1 = inlined_call_operand.vmem [shape: f32[1,32], index: 1, kind: input, shape index: {}]   ;;  %s408_s2 = inlined_call_operand.vmem [shape: f32[1,32], index: 2, kind: input, shape index: {}]   ;;  %s409_s3 = inlined_call_operand.vmem [shape: bf16[32,32], index: 3, kind: input, shape index: {}]   ;;  %s410_s4 = inlined_call_operand.vmem [shape: f32[1,32], index: 4, kind: input, shape index: {}]   ;;  %s411_s5 = inlined_call_operand.vmem [shape: bf16[32,2], index: 5, kind: input, shape index: {}]   ;;  %s412_s6 = inlined_call_operand.hbm [shape: f32[2,32], index: 6, kind: output, shape index: {0}]   ;;  %s413_s7 = inlined_call_operand.hbm [shape: f32[2,2], index: 7, kind: output, shape index: {1}]  }
   0x1   :  { %v28_v0 = vld [vmem:[%s406_s0] sm:$0x3] }
   0x2   :  { %v30_v1 = vsel %vm29_vm0, %v28_v0, 0.0 }
   0x3   :  { %31 = vadd.xlane.f32.xlu0 %v30_v1 }
   0x4   :  { %14 = vsyncpa [#allocation5], 0  ;;  %v255_v7 = vld [vmem:[%s409_s3] sm:$0xff]   ;;  %v309_v8 = vmov 0.0   ;;  %v256_v9 = vld [vmem:[%s409_s3 + $0x8] sm:$0xff]   ;;  %vm310_vm1 = vmmov 0  }
   0x5   :  { %235 = vmatprep.subr.bf16.mxu0 %v309_v8  ;;  %243 = vmatprep.subr.bf16.mxu1 %v309_v8  ;;  %v220_v14 = vld [vmem:[%s407_s1] ss:$0 sm:$0xff]  ;;  %vm85_vm2 = vcmask 261120   ;;  %v258_v21 = vld [vmem:[%s411_s5 + $0x8] sm:$0xff]   ;;  %s311_s13 = smov [#allocation2]  }
   0x6   :  { %236 = vmatpush3.bf16.msra.mxu0 %v255_v7  ;;  %239 = vmatprep.mubr.msk.bf16.mxu0 %vm310_vm1, %v309_v8  ;;  %v221_v16 = vld [vmem:[%s408_s2] ss:$0 sm:$0xff]  ;;  %s198_s14 = sshll.u32 %s311_s13, 4  ;;  %s199_s14 = int_to_ptr.vmem [resolvable:$true] %s198_s14 }
   0x7   :  { %237 = vmatprep.subr.bf16.mxu0 %v309_v8  ;;  %247 = vmatprep.mubr.msk.bf16.mxu1 %vm310_vm1, %v309_v8  ;;  %v257_v20 = vld [vmem:[%s411_s5] sm:$0xff]   ;;  %s261_s15 = scalar_lea.vmem %s199_s14, 32  ;;  %p266_p1 = scmp.lt.s32.totalorder %s199_s14, %s199_s14 }
   0x8   :  { %244 = vmatpush3.bf16.msra.mxu1 %v257_v20  ;;  %v222_v22 = vld [vmem:[%s410_s4] ss:$0 sm:$0xff]  ;;  %p262_p0 = scmp.ne.s32.totalorder %s199_s14, %s261_s15  ;;  %p267_p2 = scmp.lt.s32.totalorder %s261_s15, %s261_s15 }
   0x9   :  { %245 = vmatprep.subr.bf16.mxu1 %v309_v8 }
   0xa   :  { %238 = vmatpush3.bf16.msra.mxu0 %v256_v9  ;;  %p268_p3 = por %p267_p2, %p266_p1 }
   0xc   :  { %246 = vmatpush3.bf16.msra.mxu1 %v258_v21  ;;  %p269_p4 = pnand %p268_p3, %p262_p0 }
  0x90   :  { %v32_v2 = vpop.xlane.xlu0 %31 }
  0x91   :  { %v34_v3 = vmul.f32 0.03125, %v32_v2 }
  0x93   :  { %v35_v4 = vsub.f32 %v28_v0, %v34_v3 }
  0x95   :  { %v36_v5 = vmul.f32 %v35_v4, %v35_v4 }
  0x97   :  { %v37_v6 = vsel %vm29_vm0, %v36_v5, 0.0 }
  0x98   :  { %38 = vadd.xlane.f32.xlu0 %v37_v6 }
 0x125   :  { %v39_v10 = vpop.xlane.xlu0 %38 }
 0x126   :  { %v40_v11 = vmul.f32 0.03125, %v39_v10 }
 0x128   :  { %v41_v12 = vadd.f32 1e-06, %v40_v11 }
 0x12a   :  { %259 = vrsqrt.f32 %v41_v12 }
 0x134   :  { %v260_v13 = vpop.eup %259 }
 0x135   :  { %v43_v15 = vmul.f32 %v260_v13, %v35_v4 }
 0x137   :  { %v51_v17 = vmul.f32 %v220_v14, %v43_v15 }
 0x139   :  { %v59_v18 = vadd.f32 %v221_v16, %v51_v17 }
 0x13b   :  { %v61_v19 = vpack.c.bf16 %v59_v18, %v59_v18  ;;  %60 = vst.msk [vmem:[#allocation2] sm:$0x3] %vm29_vm0, %v59_v18 }
 0x13d   :  { %240 = vmatmul.mubr.msk.bf16.vlgmr.msra.gmra.mrb[0].mxu0 %vm85_vm2, %v61_v19 }
 0x210   :  { %v123_v23 = vpop.f32.mrb[0].mxu0 }
 0x211   :  { %v124_v24 = vadd.f32 %v222_v22, %v123_v23  ;;  %v241_v25 = vpop.f32.mrb[1].mxu0 }
 0x212   :  { %v126_v26 = vpop.f32.mrb[2].mxu0 }
 0x213   :  { %v129_v27 = vmax.f32 %v124_v24, 0.0  ;;  %v242_v28 = vpop.f32.mrb[3].mxu0 }
 0x215   :  { %v130_v29 = vpack.c.bf16 %v129_v27, %v129_v27 }
 0x217   :  { %248 = vmatmul.mubr.msk.bf16.vlgmr.msra.gmra.mrb[0].mxu1 %vm85_vm2, %v130_v29 }
 0x218   :  { %272 = shalt.err (!%p269_p4)
}
 0x219   :  { %s273_s16 = scalar_lea.hbm %s412_s6, 32 }
 0x21a   :  { %p274_p5 = scmp.ne.s32.totalorder %s412_s6, %s273_s16  ;;  %p277_p6 = scmp.lt.u32.totalorder %s273_s16, %s412_s6 }
 0x21c   :  { %p279_p7 = pnand %p277_p6, %p274_p5 }
 0x21e   :  { %282 = shalt.err (!%p279_p7)
}
 0x21f   :  { %201 = dma.vmem_to_hbm [thread:$0]  %s199_s14, 32, %s412_s6, [#allocation3]   ;;  %vm190_vm3 = vcmask 9216  }
 0x220   :  { %s312_s23 = smov [#allocation4]  }
 0x221   :  { %s208_s24 = sshll.u32 %s312_s23, 4  ;;  %s209_s24 = int_to_ptr.vmem [resolvable:$true] %s208_s24 }
 0x222   :  { %s283_s25 = scalar_lea.vmem %s209_s24, 32  ;;  %p288_p9 = scmp.lt.s32.totalorder %s209_s24, %s209_s24 }
 0x223   :  { %p284_p8 = scmp.ne.s32.totalorder %s209_s24, %s283_s25  ;;  %p289_p10 = scmp.lt.s32.totalorder %s283_s25, %s283_s25 }
 0x225   :  { %p290_p11 = por %p289_p10, %p288_p9 }
 0x227   :  { %p291_p12 = pnand %p290_p11, %p284_p8 }
 0x2ea   :  { %v184_v30 = vpop.f32.mrb[0].mxu1 }
 0x2eb   :  { %191 = vst.msk [vmem:[#allocation4] sm:$0x3] %vm190_vm3, %v184_v30  ;;  %v249_v31 = vpop.f32.mrb[1].mxu1 }
 0x2ec   :  { %v187_v32 = vpop.f32.mrb[2].mxu1 }
 0x2ed   :  { %294 = shalt.err (!%p291_p12)
}
 0x2ee   :  { %s295_s0 = scalar_lea.hbm %s413_s7, 32 }
 0x2ef   :  { %p296_p13 = scmp.ne.s32.totalorder %s413_s7, %s295_s0  ;;  %p299_p0 = scmp.lt.u32.totalorder %s295_s0, %s413_s7 }
 0x2f1   :  { %p301_p1 = pnand %p299_p0, %p296_p13 }
 0x2f3   :  { %304 = shalt.err (!%p301_p1)
}
 0x2f4   :  { %211 = dma.vmem_to_hbm [thread:$0]  %s209_s24, 32, %s413_s7, [#allocation5]   ;;  %v250_v33 = vpop.f32.mrb[3].mxu1 }
 0x2f5   :  { %305 = dma.done.wait [#allocation3], 32  }
 0x2f6   :  { %306 = vsyncadd [#allocation3], 4294967264 }
 0x2f7   :  { %307 = dma.done.wait [#allocation5], 32  }
 0x2f8   :  { %308 = vsyncadd [#allocation5], 4294967264 }
 0x2f9   :  { %218 = vsyncpa [#allocation3], 1 }
 0x2fa   :  { %219 = vsyncpa [#allocation5], 1 }

// kernel: dino_classifier_forward.8
= control target key start
LH: loop header
LB: loop body
LE: loop exit
PB: predicated region body
PF: predicated region fallthrough
CT: control target
= control target key end

     0   :  { %vm29_vm0 = vcmask 261120   ;;  %vm33_vm1 = vcmask 254976   ;;  %v358_v15 = vmov 0.0   ;;  %vm359_vm2 = vmmov 0   ;;  %s471_s0 = inlined_call_operand.vmem [shape: f32[10,32], index: 0, kind: input, shape index: {}]   ;;  %s472_s3 = inlined_call_operand.vmem [shape: bf16[32,128], index: 3, kind: input, shape index: {}]   ;;  %s473_s1 = inlined_call_operand.vmem [shape: f32[1,32], index: 1, kind: input, shape index: {}]   ;;  %s474_s2 = inlined_call_operand.vmem [shape: f32[1,32], index: 2, kind: input, shape index: {}]   ;;  %s475_s5 = inlined_call_operand.vmem [shape: bf16[128,32], index: 5, kind: input, shape index: {}]   ;;  %s476_s4 = inlined_call_operand.vmem [shape: f32[1,128], index: 4, kind: input, shape index: {}]   ;;  %s477_s6 = inlined_call_operand.vmem [shape: f32[1,32], index: 6, kind: input, shape index: {}]   ;;  %s478_s7 = inlined_call_operand.vmem [shape: f32[10,32], index: 7, kind: output, shape index: {}]  }
   0x1   :  { %v403_v0 = vld [vmem:[%s471_s0] sm:$0xff]  ;;  %v408_v1 = vld [vmem:[%s471_s0 + $0x8] sm:$0x3]  ;;  %310 = vmatprep.subr.bf16.mxu0 %v358_v15  ;;  %318 = vmatprep.subr.bf16.mxu1 %v358_v15  ;;  %v344_v36 = vld [vmem:[%s475_s5 + $0x10] sm:$0xff]  }
   0x2   :  { %v30_v2 = vsel %vm29_vm0, %v403_v0, 0.0  ;;  %v34_v3 = vsel %vm33_vm1, %v408_v1, 0.0  ;;  %v340_v14 = vld [vmem:[%s472_s3] sm:$0xff]   ;;  %v341_v16 = vld [vmem:[%s472_s3 + $0x8] sm:$0xff]   ;;  %314 = vmatprep.mubr.msk.bf16.mxu0 %vm359_vm2, %v358_v15  ;;  %334 = vmatprep.mubr.msk.bf16.mxu1 %vm359_vm2, %v358_v15  ;;  %v345_v37 = vld [vmem:[%s475_s5 + $0x18] sm:$0xff]  }
   0x3   :  { %31 = vadd.xlane.f32.xlu0 %v30_v2  ;;  %311 = vmatpush3.bf16.msra.mxu0 %v340_v14  ;;  %v283_v25 = vld [vmem:[%s473_s1] ss:$0 sm:$0xff]  ;;  %v343_v35 = vld [vmem:[%s475_s5 + $0x8] sm:$0xff]   ;;  %v348_v40 = vld [vmem:[%s475_s5 + $0x30] sm:$0xff]  }
   0x4   :  { %312 = vmatprep.subr.bf16.mxu0 %v358_v15  ;;  %v284_v29 = vld [vmem:[%s474_s2] ss:$0 sm:$0xff]  ;;  %v347_v39 = vld [vmem:[%s475_s5 + $0x28] sm:$0xff]   ;;  %v349_v41 = vld [vmem:[%s475_s5 + $0x38] sm:$0xff]  }
   0x5   :  { %v342_v34 = vld [vmem:[%s475_s5] sm:$0xff]  }
   0x6   :  { %319 = vmatpush3.bf16.msra.mxu1 %v342_v34  ;;  %v346_v38 = vld [vmem:[%s475_s5 + $0x20] sm:$0xff]  }
   0x7   :  { %35 = vadd.xlane.f32.xlu0 %v34_v3  ;;  %313 = vmatpush3.bf16.msra.mxu0 %v341_v16  ;;  %v285_v42 = vld [vmem:[%s476_s4] ss:$0 sm:$0xff] }
   0x8   :  { %320 = vmatprep.subr.bf16.mxu1 %v358_v15 }
   0xa   :  { %321 = vmatpush3.bf16.msra.mxu1 %v343_v35 }
   0xb   :  { %322 = vmatprep.subr.bf16.mxu1 %v358_v15 }
   0xe   :  { %323 = vmatpush3.bf16.msra.mxu1 %v344_v36 }
   0xf   :  { %324 = vmatprep.subr.bf16.mxu1 %v358_v15 }
  0x12   :  { %325 = vmatpush3.bf16.msra.mxu1 %v345_v37 }
  0x13   :  { %326 = vmatprep.subr.bf16.mxu1 %v358_v15 }
  0x16   :  { %327 = vmatpush3.bf16.msra.mxu1 %v346_v38 }
  0x17   :  { %328 = vmatprep.subr.bf16.mxu1 %v358_v15 }
  0x1a   :  { %329 = vmatpush3.bf16.msra.mxu1 %v347_v39 }
  0x1b   :  { %330 = vmatprep.subr.bf16.mxu1 %v358_v15 }
  0x1e   :  { %331 = vmatpush3.bf16.msra.mxu1 %v348_v40 }
  0x1f   :  { %332 = vmatprep.subr.bf16.mxu1 %v358_v15 }
  0x22   :  { %333 = vmatpush3.bf16.msra.mxu1 %v349_v41 }
  0x90   :  { %v32_v4 = vpop.xlane.xlu0 %31 }
  0x91   :  { %v38_v5 = vmul.f32 0.03125, %v32_v4 }
  0x93   :  { %v40_v6 = vsub.f32 %v403_v0, %v38_v5 }
  0x94   :  { %v36_v7 = vpop.xlane.xlu0 %35 }
  0x95   :  { %v39_v8 = vmul.f32 0.03125, %v36_v7  ;;  %v42_v9 = vmul.f32 %v40_v6, %v40_v6 }
  0x97   :  { %v41_v10 = vsub.f32 %v408_v1, %v39_v8  ;;  %v44_v11 = vsel %vm29_vm0, %v42_v9, 0.0 }
  0x98   :  { %45 = vadd.xlane.f32.xlu1 %v44_v11 }
  0x99   :  { %v43_v12 = vmul.f32 %v41_v10, %v41_v10 }
  0x9b   :  { %v47_v13 = vsel %vm33_vm1, %v43_v12, 0.0 }
  0x9c   :  { %48 = vadd.xlane.f32.xlu1 %v47_v13 }
 0x125   :  { %v46_v17 = vpop.xlane.xlu1 %45 }
 0x126   :  { %v50_v18 = vmul.f32 0.03125, %v46_v17 }
 0x128   :  { %v52_v19 = vadd.f32 1e-06, %v50_v18 }
 0x129   :  { %v49_v20 = vpop.xlane.xlu1 %48 }
 0x12a   :  { %350 = vrsqrt.f32 %v52_v19  ;;  %v51_v21 = vmul.f32 0.03125, %v49_v20 }
 0x12c   :  { %v53_v22 = vadd.f32 1e-06, %v51_v21 }
 0x12e   :  { %352 = vrsqrt.f32 %v53_v22 }
 0x134   :  { %v351_v23 = vpop.eup %350 }
 0x135   :  { %v56_v24 = vmul.f32 %v351_v23, %v40_v6  ;;  %v289_v6 = vld [vmem:[%s477_s6] ss:$0 sm:$0xff] }
 0x137   :  { %v65_v28 = vmul.f32 %v283_v25, %v56_v24 }
 0x138   :  { %v353_v26 = vpop.eup %352 }
 0x139   :  { %v57_v27 = vmul.f32 %v353_v26, %v41_v10  ;;  %v74_v31 = vadd.f32 %v284_v29, %v65_v28 }
 0x13b   :  { %v66_v30 = vmul.f32 %v283_v25, %v57_v27 }
 0x13d   :  { %v75_v32 = vadd.f32 %v284_v29, %v66_v30 }
 0x13f   :  { %v76_v33 = vpack.c.bf16 %v75_v32, %v74_v31 }
 0x141   :  { %315 = vmatmul.mubr.msk.bf16.vlgmr.msra.gmra.mrb[0].mxu0 %vm29_vm0, %v76_v33 }
 0x214   :  { %v137_v43 = vpop.f32.mrb[0].mxu0 }
 0x215   :  { %v138_v44 = vadd.f32 %v285_v42, %v137_v43  ;;  %v316_v45 = vpop.f32.mrb[1].mxu0 }
 0x216   :  { %v140_v46 = vpop.f32.mrb[2].mxu0 }
 0x217   :  { %v144_v47 = vmul.f32 %v138_v44, %v138_v44  ;;  %v141_v48 = vadd.f32 %v285_v42, %v140_v46  ;;  %v317_v49 = vpop.f32.mrb[3].mxu0 }
 0x219   :  { %v146_v50 = vmul.f32 %v144_v47, %v138_v44  ;;  %v145_v51 = vmul.f32 %v141_v48, %v141_v48 }
 0x21b   :  { %v148_v52 = vmul.f32 0.044715, %v146_v50  ;;  %v147_v53 = vmul.f32 %v145_v51, %v141_v48 }
 0x21d   :  { %v150_v54 = vadd.f32 %v148_v52, %v138_v44  ;;  %v149_v55 = vmul.f32 0.044715, %v147_v53 }
 0x21f   :  { %v152_v56 = vmul.f32 0.7978846, %v150_v54  ;;  %v151_v57 = vadd.f32 %v149_v55, %v141_v48 }
 0x221   :  { %354 = vtanh.f32 %v152_v56  ;;  %v153_v58 = vmul.f32 0.7978846, %v151_v57 }
 0x223   :  { %356 = vtanh.f32 %v153_v58 }
 0x22b   :  { %v355_v59 = vpop.eup %354 }
 0x22c   :  { %v156_v60 = vadd.f32 1.0, %v355_v59 }
 0x22d   :  { %v357_v61 = vpop.eup %356 }
 0x22e   :  { %v157_v62 = vadd.f32 1.0, %v357_v61  ;;  %v158_v63 = vmul.f32 0.5, %v156_v60 }
 0x230   :  { %v159_v2 = vmul.f32 0.5, %v157_v62  ;;  %v160_v3 = vmul.f32 %v158_v63, %v138_v44 }
 0x232   :  { %v161_v4 = vmul.f32 %v159_v2, %v141_v48 }
 0x234   :  { %v162_v5 = vpack.c.bf16 %v161_v4, %v160_v3 }
 0x236   :  { %335 = vmatmul.mubr.bf16.vlgmr.msra.gmra.mrb[0].mxu1 %v162_v5 }
 0x309   :  { %v268_v7 = vpop.f32.mrb[0].mxu1 }
 0x30a   :  { %v269_v8 = vadd.f32 %v289_v6, %v268_v7  ;;  %v336_v9 = vpop.f32.mrb[1].mxu1 }
 0x30b   :  { %v271_v10 = vpop.f32.mrb[2].mxu1 }
 0x30c   :  { %v275_v11 = vadd.f32 %v269_v8, %v403_v0  ;;  %v272_v12 = vadd.f32 %v289_v6, %v271_v10  ;;  %v337_v13 = vpop.f32.mrb[3].mxu1 }
 0x30e   :  { %277 = vst.msk [vmem:[%s478_s7] sm:$0xff] %vm29_vm0, %v275_v11  ;;  %v276_v14 = vadd.f32 %v272_v12, %v408_v1 }
 0x310   :  { %278 = vst.msk [vmem:[%s478_s7 + $0x8] sm:$0x3] %vm33_vm1, %v276_v14 }

// kernel: dino_classifier_forward.7
= control target key start
LH: loop header
LB: loop body
LE: loop exit
PB: predicated region body
PF: predicated region fallthrough
CT: control target
= control target key end

     0   :  { %s949_s24 = smov 0   ;;  %s1051_s0 = inlined_call_operand.vmem [shape: f32[2,5,32], index: 0, kind: input, shape index: {}]   ;;  %s1052_s1 = inlined_call_operand.vmem [shape: f32[1,32], index: 1, kind: input, shape index: {}]   ;;  %s1053_s2 = inlined_call_operand.vmem [shape: f32[1,32], index: 2, kind: input, shape index: {}]   ;;  %s1054_s3 = inlined_call_operand.vmem [shape: bf16[32,96], index: 3, kind: input, shape index: {}]   ;;  %s1055_s4 = inlined_call_operand.vmem [shape: f32[1,96], index: 4, kind: input, shape index: {}]   ;;  %s1056_s5 = inlined_call_operand.vmem [shape: bf16[2,16,32], index: 5, kind: input, shape index: {}]   ;;  %s1057_s6 = inlined_call_operand.vmem [shape: f32[1,32], index: 6, kind: input, shape index: {}]   ;;  %s1058_s7 = inlined_call_operand.vmem [shape: f32[2,5,32], index: 7, kind: output, shape index: {}]  }
   0x1 LB: > { %s773_s25 = sadd.s32 4294967295, %s899_s24   ;;  %p777_p0 = scmp.ge.s32.totalorder %s899_s24, 1  ;;  %s899_s24 = sphi %s949_s24, %s17_s24  }
   0x2   : > { %p236_p1 = scmp.lt.s32.totalorder %s899_s24, 3 }
   0x4   : > { %p237_p2 = pnand %p777_p0, %p236_p1 }
   0x5   : > { %p266_p3 = scmp.lt.s32.totalorder (!%p237_p2), %s773_s25, 1  ;;  %vm276_vm0 = vcmask (!%p237_p2), 258048   ;;  %v879_v7 = vld [vmem:[%s1054_s3] sm:$0xff] (!%p237_p2)   ;;  %v901_v8 = vmov (!%p237_p2), 0.0   ;;  %vm902_vm1 = vmmov (!%p237_p2), 0   ;;  %v880_v9 = vld [vmem:[%s1054_s3 + $0x8] sm:$0xff] (!%p237_p2)  }
   0x6   : > { %240 = sbr.rel (%p237_p2) target bundleno = 1858 (0x742), region = 48  ;;  %814 = vmatprep.subr.bf16.mxu0 (!%p237_p2), %v901_v8  ;;  %818 = vmatprep.mubr.msk.bf16.mxu0 (!%p237_p2), %vm902_vm1, %v901_v8  ;;  %v780_v14 = vld [vmem:[%s1052_s1] ss:$0 sm:$0xff] (!%p237_p2)  ;;  %vm331_vm2 = vcmask (!%p237_p2), 261120   ;;  %s903_s17 = smov (!%p237_p2), 64   ;;  %vm453_vm3 = vcmask (!%p237_p2), 1041408  }
   0x7   : > { %815 = vmatpush3.bf16.msra.mxu0 (!%p237_p2), %v879_v7  ;;  %822 = vmatprep.subr.bf16.mxu1 (!%p237_p2), %v901_v8  ;;  %v781_v16 = vld [vmem:[%s1053_s2] ss:$0 sm:$0xff] (!%p237_p2)  ;;  %s904_s18 = smov (!%p237_p2), 96   ;;  %s905_s19 = smov (!%p237_p2), 80   ;;  %vm454_vm4 = vcmask (!%p237_p2), 1042432   ;;  %v907_v27 = vmov (!%p237_p2), 65535  }
   0x8   : > { %816 = vmatprep.subr.bf16.mxu0 (!%p237_p2), %v901_v8  ;;  %824 = vmatprep.mubr.msk.bf16.mxu1 (!%p237_p2), %vm902_vm1, %v901_v8  ;;  %v782_v20 = vld [vmem:[%s1055_s4] ss:$0 sm:$0xff] (!%p237_p2)  ;;  %s906_s20 = smov (!%p237_p2), 112   ;;  %v455_v28 = vsel (!%p237_p2), %vm453_vm3, 4294967295, %v907_v27  ;;  %vm387_vm5 = vcmask (!%p237_p2), 130048   ;;  %vm435_vm6 = vcmask (!%p237_p2), 36864  }
   0x9   : > { %v1002_v29 = vsel (!%p237_p2), %vm454_vm4, %v455_v28, 0  ;;  %vm449_vm7 = vcmask (!%p237_p2), 39936   ;;  %v881_v49 = vld [vmem:[%s1056_s5] sm:$0xff] (!%p237_p2)   ;;  %s908_s23 = smov (!%p237_p2), 48  }
   0xb   : > { %817 = vmatpush3.bf16.msra.mxu0 (!%p237_p2), %v880_v9 }
   0xc   : > { %828 = vmatprep.subr.bf16.mxu0 (!%p237_p2), %v901_v8 }
   0xd   : > { %s1060_s25 = smov (!%p266_p3, %s773_s25), 1 }
   0xe   : > { %s778_s26 = sshll.u32 %s1060_s25, 3 }
   0xf   : > { %s269_s29 = scalar_lea.vmem %s1051_s0, %s778_s26  ;;  %s273_s10 = scalar_lea.vmem %s1058_s7, %s778_s26 }
  0x10   : > { %v965_v0 = vld [vmem:[%s269_s29] sm:$0x1f] }
  0x11   : > { %v277_v1 = vsel %vm276_vm0, %v965_v0, 0.0 }
  0x12   : > { %278 = vadd.xlane.f32.xlu0 %v277_v1 }
  0x9f   : > { %v279_v2 = vpop.xlane.xlu0 %278 }
  0xa0   : > { %v281_v3 = vmul.f32 0.03125, %v279_v2 }
  0xa2   : > { %v282_v4 = vsub.f32 %v965_v0, %v281_v3 }
  0xa4   : > { %v283_v5 = vmul.f32 %v282_v4, %v282_v4 }
  0xa6   : > { %v284_v6 = vsel %vm276_vm0, %v283_v5, 0.0 }
  0xa7   : > { %285 = vadd.xlane.f32.xlu0 %v284_v6 }
 0x134   : > { %v286_v10 = vpop.xlane.xlu0 %285 }
 0x135   : > { %v287_v11 = vmul.f32 0.03125, %v286_v10  ;;  %v882_v10 = vld [vmem:[%s1056_s5 + $0x8] sm:$0xff]  }
 0x137   : > { %v288_v12 = vadd.f32 1e-06, %v287_v11 }
 0x139   : > { %883 = vrsqrt.f32 %v288_v12 }
 0x143   : > { %v884_v13 = vpop.eup %883 }
 0x144   : > { %v290_v15 = vmul.f32 %v884_v13, %v282_v4 }
 0x146   : > { %v298_v17 = vmul.f32 %v780_v14, %v290_v15 }
 0x148   : > { %v306_v18 = vadd.f32 %v781_v16, %v298_v17 }
 0x14a   : > { %v307_v19 = vpack.c.bf16 %v306_v18, %v306_v18 }
 0x14c   : > { %819 = vmatmul.mubr.msk.bf16.vlgmr.msra.gmra.mrb[0].mxu0 %vm331_vm2, %v307_v19 }
 0x14d   : > { %830 = vmatprep.mubr.msk.bf16.mxu0 %vm902_vm1, %v901_v8 }
 0x21f   : > { %v369_v21 = vpop.f32.mrb[0].mxu0 }
 0x220   : > { %v370_v22 = vadd.f32 %v782_v20, %v369_v21  ;;  %v820_v23 = vpop.f32.mrb[1].mxu0 }
 0x221   : > { %v372_v24 = vpop.f32.mrb[2].mxu0 }
 0x222   : > { %v996_v25 = vpack.c.bf16 %v370_v22, %v370_v22  ;;  %v821_v26 = vpop.f32.mrb[3].mxu0 }
 0x224   : > { %447 = vrot.lane.b32.xlu0 %v996_v25, %s903_s17  ;;  %385 = vrot.lane.b32.xlu1 %v996_v25, %s904_s18 }
 0x228   : > { %556 = vrot.lane.b32.xlu0 %v996_v25, %s905_s19 }
 0x22c   : > { %554 = vrot.lane.b32.xlu0 %v996_v25, %s906_s20 }
 0x296   : > { %v448_v30 = vpop.permute.xlu0 %447  ;;  %v386_v31 = vpop.permute.xlu1 %385 }
 0x297   : > { %v458_v32 = vand.u32 %v1002_v29, %v448_v30  ;;  %v392_v33 = vsel %vm387_vm5, %v386_v31, 0 }
 0x298   : > { %823 = vmatpush3.bf16.xpose.msra.mxu1 %v392_v33 }
 0x299   : > { %829 = vmatpush3.bf16.msra.mxu0 %v458_v32  ;;  %834 = vmatprep.subr.bf16.mxu1 %v901_v8 }
 0x29a   : > { %840 = vmatprep.subr.bf16.mxu0 %v901_v8  ;;  %v557_v44 = vpop.permute.xlu0 %556 }
 0x29b   : > { %v562_v47 = vsel %vm387_vm5, %v557_v44, 0 }
 0x29e   : > { %v555_v48 = vpop.permute.xlu0 %554 }
 0x29f   : > { %825 = vmatmul.mubr.msk.bf16.vlgmr.msra.gmra.mrb[0].mxu1 %vm387_vm5, %v996_v25 }
 0x2a0   : > { %836 = vmatprep.mubr.msk.bf16.mxu1 %vm902_vm1, %v901_v8  ;;  %835 = vmatpush3.bf16.msra.mxu1 %v881_v49 }
 0x2a1   : > { %846 = vmatprep.subr.bf16.mxu1 %v901_v8 }
 0x372   : > { %v428_v34 = vpop.f32.mrb[0].mxu1 }
 0x373   : > { %v434_v35 = vmul.f32 0.25, %v428_v34  ;;  %v826_v36 = vpop.f32.mrb[1].mxu1 }
 0x374   : > { %v431_v37 = vpop.f32.mrb[2].mxu1 }
 0x375   : > { %v827_v38 = vpop.f32.mrb[3].mxu1  ;;  %v436_v39 = vsel %vm435_vm6, %v434_v35, -inf }
 0x376   : > { %437 = vmax.xlane.f32.xlu1 %v436_v39 }
 0x403   : > { %v438_v40 = vpop.xlane.xlu1 %437 }
 0x404   : > { %v439_v41 = vsub.f32 %v434_v35, %v438_v40 }
 0x406   : > { %v440_v42 = vmul.f32 1.442695, %v439_v41 }
 0x408   : > { %885 = vpow2.f32 %v440_v42 }
 0x412   : > { %v886_v43 = vpop.eup %885 }
 0x413   : > { %v442_v45 = vsel %vm435_vm6, %v886_v43, 0.0  ;;  %v446_v46 = vpack.c.bf16 %v886_v43, %v886_v43 }
 0x414   : > { %443 = vadd.xlane.f32.xlu0 %v442_v45 }
 0x415   : > { %831 = vmatmul.mubr.msk.bf16.vlgmr.msra.gmra.mrb[4].mxu0 %vm449_vm7, %v446_v46 }
 0x416   : > { %841 = vmatpush3.bf16.xpose.msra.mxu0 %v562_v47  ;;  %842 = vmatprep.mubr.msk.bf16.mxu0 %vm902_vm1, %v901_v8 }
 0x41d   : > { %843 = vmatmul.mubr.msk.bf16.vlgmr.msra.gmra.mrb[8].mxu0 %vm387_vm5, %v555_v48 }
 0x4a1   : > { %v444_v50 = vpop.xlane.xlu0 %443 }
 0x4a2   : > { %887 = vrcp.f32 %v444_v50 }
 0x4ac   : > { %v888_v51 = vpop.eup %887 }
 0x4e8   : > { %v494_v52 = vpop.f32.mrb[4].mxu0 }
 0x4e9   : > { %v500_v53 = vmul.f32 %v888_v51, %v494_v52  ;;  %v832_v54 = vpop.f32.mrb[5].mxu0 }
 0x4ea   : > { %v497_v55 = vpop.f32.mrb[6].mxu0 }
 0x4eb   : > { %v501_v56 = vpack.c.bf16 %v500_v53, %v500_v53  ;;  %v833_v57 = vpop.f32.mrb[7].mxu0 }
 0x4ed   : > { %837 = vmatmul.mubr.msk.bf16.vlgmr.msra.gmra.mrb[4].mxu1 %vm387_vm5, %v501_v56 }
 0x4ee   : > { %848 = vmatprep.mubr.msk.bf16.mxu1 %vm902_vm1, %v901_v8 }
 0x4f0   : > { %v598_v58 = vpop.f32.mrb[8].mxu0 }
 0x4f1   : > { %v604_v59 = vmul.f32 0.25, %v598_v58  ;;  %v844_v60 = vpop.f32.mrb[9].mxu0 }
 0x4f2   : > { %v601_v61 = vpop.f32.mrb[10].mxu0 }
 0x4f3   : > { %v845_v62 = vpop.f32.mrb[11].mxu0  ;;  %v605_v63 = vsel %vm435_vm6, %v604_v59, -inf }
 0x4f4   : > { %606 = vmax.xlane.f32.xlu1 %v605_v63 }
 0x505   : > { %616 = vrot.lane.b32.xlu1 %v996_v25, %s908_s23 }
 0x581   : > { %v607_v1 = vpop.xlane.xlu1 %606 }
 0x582   : > { %v608_v2 = vsub.f32 %v604_v59, %v607_v1 }
 0x584   : > { %v609_v3 = vmul.f32 1.442695, %v608_v2 }
 0x585   : > { %v617_v4 = vpop.permute.xlu1 %616 }
 0x586   : > { %889 = vpow2.f32 %v609_v3  ;;  %v622_v5 = vand.u32 %v617_v4, %v1002_v29 }
 0x588   : > { %847 = vmatpush3.bf16.msra.mxu1 %v622_v5 }
 0x589   : > { %852 = vmatprep.subr.bf16.mxu1 %v901_v8 }
 0x590   : > { %v890_v6 = vpop.eup %889 }
 0x591   : > { %v611_v7 = vsel %vm435_vm6, %v890_v6, 0.0  ;;  %v615_v9 = vpack.c.bf16 %v890_v6, %v890_v6 }
 0x592   : > { %612 = vadd.xlane.f32.xlu1 %v611_v7 }
 0x593   : > { %849 = vmatmul.mubr.msk.bf16.vlgmr.msra.gmra.mrb[8].mxu1 %vm449_vm7, %v615_v9 }
 0x594   : > { %854 = vmatprep.mubr.msk.bf16.mxu1 %vm902_vm1, %v901_v8  ;;  %853 = vmatpush3.bf16.msra.mxu1 %v882_v10  ;;  %v786_v8 = vld [vmem:[%s1057_s6] ss:$0 sm:$0xff] }
 0x595   : > { %v382_v19 = vadd.f32 %v786_v8, %v965_v0 }
 0x61f   : > { %v613_v11 = vpop.xlane.xlu1 %612 }
 0x620   : > { %891 = vrcp.f32 %v613_v11 }
 0x62a   : > { %v892_v12 = vpop.eup %891 }
 0x666   : > { %v658_v13 = vpop.f32.mrb[8].mxu1 }
 0x667   : > { %v664_v14 = vmul.f32 %v892_v12, %v658_v13  ;;  %v850_v15 = vpop.f32.mrb[9].mxu1 }
 0x668   : > { %v661_v16 = vpop.f32.mrb[10].mxu1 }
 0x669   : > { %v665_v17 = vpack.c.bf16 %v664_v14, %v664_v14  ;;  %v851_v18 = vpop.f32.mrb[11].mxu1 }
 0x66b   : > { %855 = vmatmul.mubr.msk.bf16.vlgmr.msra.gmra.mrb[4].mxu1 %vm387_vm5, %v665_v17 }
 0x73e   : > { %v712_v20 = vpop.f32.mrb[4].mxu1 }
 0x73f   : > { %v858_v21 = vadd.f32 %v712_v20, %v382_v19  ;;  %v856_v22 = vpop.f32.mrb[5].mxu1 }
 0x740   : > { %v715_v23 = vpop.f32.mrb[6].mxu1 }
 0x741   : > { %719 = vst.msk [vmem:[%s273_s10] sm:$0x1f] %vm276_vm0, %v858_v21  ;;  %v857_v24 = vpop.f32.mrb[7].mxu1 }
 0x742 PF: > { %s17_s24 = sadd.s32 1, %s899_s24  }
 0x743   : > { %p14_p4 = scmp.ge.s32.totalorder %s17_s24, 4  }
 0x745   :  { %16 = sbr.rel (!%p14_p4) target bundleno = 1 (0x1), region = 79 }

// kernel: dino_classifier_forward.6
= control target key start
LH: loop header
LB: loop body
LE: loop exit
PB: predicated region body
PF: predicated region fallthrough
CT: control target
= control target key end

     0   :  { %vm538_vm0 = vcmask 261120   ;;  %s895_s1 = inlined_call_operand.vmem [shape: bf16[768,32], index: 1, kind: input, shape index: {}]   ;;  %s896_s0 = inlined_call_operand.vmem [shape: f32[8,768], index: 0, kind: input, shape index: {}]   ;;  %s897_s2 = inlined_call_operand.vmem [shape: f32[1,32], index: 2, kind: input, shape index: {}]   ;;  %s898_s3 = inlined_call_operand.vmem [shape: f32[8,32], index: 3, kind: output, shape index: {}]  }
   0x1   :  { %v659_v0 = vld [vmem:[%s895_s1 + $0x40] sm:$0xff]   ;;  %v663_v4 = vld [vmem:[%s895_s1 + $0x48] sm:$0xff]   ;;  %v667_v8 = vld [vmem:[%s895_s1 + $0x50] sm:$0xff]  }
   0x2   :  { %v660_v1 = vld [vmem:[%s895_s1] sm:$0xff]   ;;  %593 = vmatprep.subr.bf16.mxu0 %v659_v0  ;;  %v664_v5 = vld [vmem:[%s895_s1 + $0x8] sm:$0xff]   ;;  %v668_v9 = vld [vmem:[%s895_s1 + $0x10] sm:$0xff]  }
   0x3   :  { %v661_v2 = vld [vmem:[%s895_s1 + $0xc0] sm:$0xff]   ;;  %594 = vmatpush3.bf16.msra.mxu0 %v660_v1  ;;  %v665_v6 = vld [vmem:[%s895_s1 + $0xc8] sm:$0xff]   ;;  %v669_v10 = vld [vmem:[%s895_s1 + $0xd0] sm:$0xff]  }
   0x4   :  { %v662_v3 = vld [vmem:[%s895_s1 + $0x80] sm:$0xff]   ;;  %615 = vmatprep.subr.bf16.mxu1 %v661_v2  ;;  %595 = vmatprep.subr.bf16.mxu0 %v663_v4  ;;  %v666_v7 = vld [vmem:[%s895_s1 + $0x88] sm:$0xff]   ;;  %v670_v11 = vld [vmem:[%s895_s1 + $0x90] sm:$0xff]  }
   0x5   :  { %616 = vmatpush3.bf16.msra.mxu1 %v662_v3  ;;  %v671_v12 = vld [vmem:[%s895_s1 + $0x58] sm:$0xff]   ;;  %v675_v16 = vld [vmem:[%s895_s1 + $0x60] sm:$0xff]   ;;  %v679_v20 = vld [vmem:[%s895_s1 + $0x68] sm:$0xff]  }
   0x6   :  { %617 = vmatprep.subr.bf16.mxu1 %v665_v6  ;;  %v672_v13 = vld [vmem:[%s895_s1 + $0x18] sm:$0xff]   ;;  %v676_v17 = vld [vmem:[%s895_s1 + $0x20] sm:$0xff]   ;;  %v680_v21 = vld [vmem:[%s895_s1 + $0x28] sm:$0xff]  }
   0x7   :  { %596 = vmatpush3.bf16.msra.mxu0 %v664_v5  ;;  %v673_v14 = vld [vmem:[%s895_s1 + $0xd8] sm:$0xff]   ;;  %v677_v18 = vld [vmem:[%s895_s1 + $0xe0] sm:$0xff]   ;;  %v681_v22 = vld [vmem:[%s895_s1 + $0xe8] sm:$0xff]  }
   0x8   :  { %597 = vmatprep.subr.bf16.mxu0 %v667_v8  ;;  %v674_v15 = vld [vmem:[%s895_s1 + $0x98] sm:$0xff]   ;;  %v678_v19 = vld [vmem:[%s895_s1 + $0xa0] sm:$0xff]   ;;  %v682_v23 = vld [vmem:[%s895_s1 + $0xa8] sm:$0xff]  }
   0x9   :  { %618 = vmatpush3.bf16.msra.mxu1 %v666_v7  ;;  %v683_v24 = vld [vmem:[%s895_s1 + $0x70] sm:$0xff]   ;;  %v687_v28 = vld [vmem:[%s895_s1 + $0x78] sm:$0xff]   ;;  %v16_v31 = vld [vmem:[%s896_s0 + $0x8] sm:$0xff] }
   0xa   :  { %619 = vmatprep.subr.bf16.mxu1 %v669_v10  ;;  %v684_v25 = vld [vmem:[%s895_s1 + $0x30] sm:$0xff]   ;;  %v688_v29 = vld [vmem:[%s895_s1 + $0x38] sm:$0xff]   ;;  %v22_v32 = vpack.c.bf16 %v16_v31, %v16_v31  ;;  %v15_v34 = vld [vmem:[%s896_s0] sm:$0xff] }
   0xb   :  { %598 = vmatpush3.bf16.msra.mxu0 %v668_v9  ;;  %v685_v26 = vld [vmem:[%s895_s1 + $0xf0] sm:$0xff]   ;;  %v689_v30 = vld [vmem:[%s895_s1 + $0xf8] sm:$0xff]   ;;  %v21_v35 = vpack.c.bf16 %v15_v34, %v15_v34  ;;  %v691_v36 = vld [vmem:[%s895_s1 + $0x140] sm:$0xff]  }
   0xc   :  { %599 = vmatprep.subr.bf16.mxu0 %v671_v12  ;;  %v686_v27 = vld [vmem:[%s895_s1 + $0xb0] sm:$0xff]   ;;  %v690_v33 = vld [vmem:[%s895_s1 + $0xb8] sm:$0xff]   ;;  %450 = vmatprep.mubr.bf16.mxu0 %v22_v32  ;;  %v692_v39 = vld [vmem:[%s895_s1 + $0x100] sm:$0xff]  }
   0xd   :  { %620 = vmatpush3.bf16.msra.mxu1 %v670_v11  ;;  %v18_v37 = vld [vmem:[%s896_s0 + $0x18] sm:$0xff]  ;;  %v17_v40 = vld [vmem:[%s896_s0 + $0x10] sm:$0xff]  ;;  %v693_v42 = vld [vmem:[%s895_s1 + $0x148] sm:$0xff]  }
   0xe   :  { %621 = vmatprep.subr.bf16.mxu1 %v673_v14  ;;  %v24_v38 = vpack.c.bf16 %v18_v37, %v18_v37  ;;  %v23_v41 = vpack.c.bf16 %v17_v40, %v17_v40  ;;  %v694_v43 = vld [vmem:[%s895_s1 + $0x108] sm:$0xff]   ;;  %v695_v44 = vld [vmem:[%s895_s1 + $0x150] sm:$0xff]   ;;  %v697_v46 = vld [vmem:[%s895_s1 + $0x158] sm:$0xff]  }
   0xf   :  { %600 = vmatpush3.bf16.msra.mxu0 %v672_v13  ;;  %v696_v45 = vld [vmem:[%s895_s1 + $0x110] sm:$0xff]   ;;  %v698_v47 = vld [vmem:[%s895_s1 + $0x118] sm:$0xff]   ;;  %v699_v48 = vld [vmem:[%s895_s1 + $0x160] sm:$0xff]  }
  0x10   :  { %601 = vmatprep.subr.bf16.mxu0 %v675_v16  ;;  %490 = vmatprep.mubr.bf16.mxu1 %v24_v38  ;;  %v700_v49 = vld [vmem:[%s895_s1 + $0x120] sm:$0xff]   ;;  %v701_v50 = vld [vmem:[%s895_s1 + $0x168] sm:$0xff]   ;;  %v703_v54 = vld [vmem:[%s895_s1 + $0x170] sm:$0xff]  }
  0x11   :  { %622 = vmatpush3.bf16.msra.mxu1 %v674_v15  ;;  %v20_v51 = vld [vmem:[%s896_s0 + $0x28] sm:$0xff]  ;;  %v704_v55 = vld [vmem:[%s895_s1 + $0x130] sm:$0xff]   ;;  %v705_v56 = vld [vmem:[%s895_s1 + $0x178] sm:$0xff]  }
  0x12   :  { %623 = vmatprep.subr.bf16.mxu1 %v677_v18  ;;  %v26_v52 = vpack.c.bf16 %v20_v51, %v20_v51  ;;  %v702_v53 = vld [vmem:[%s895_s1 + $0x128] sm:$0xff]   ;;  %v706_v57 = vld [vmem:[%s895_s1 + $0x138] sm:$0xff]   ;;  %v19_v58 = vld [vmem:[%s896_s0 + $0x20] sm:$0xff] }
  0x13   :  { %602 = vmatpush3.bf16.msra.mxu0 %v676_v17  ;;  %v25_v59 = vpack.c.bf16 %v19_v58, %v19_v58  ;;  %v544_v61 = vld [vmem:[%s897_s2] ss:$0 sm:$0xff] }
  0x14   :  { %603 = vmatprep.subr.bf16.mxu0 %v679_v20 }
  0x15   :  { %624 = vmatpush3.bf16.msra.mxu1 %v678_v19 }
  0x16   :  { %625 = vmatprep.subr.bf16.mxu1 %v681_v22 }
  0x17   :  { %604 = vmatpush3.bf16.msra.mxu0 %v680_v21 }
  0x18   :  { %605 = vmatprep.subr.bf16.mxu0 %v683_v24 }
  0x19   :  { %626 = vmatpush3.bf16.msra.mxu1 %v682_v23 }
  0x1a   :  { %627 = vmatprep.subr.bf16.mxu1 %v685_v26 }
  0x1b   :  { %606 = vmatpush3.bf16.msra.mxu0 %v684_v25 }
  0x1c   :  { %607 = vmatprep.subr.bf16.mxu0 %v687_v28 }
  0x1d   :  { %628 = vmatpush3.bf16.msra.mxu1 %v686_v27 }
  0x1e   :  { %629 = vmatprep.subr.bf16.mxu1 %v689_v30 }
  0x1f   :  { %608 = vmatpush3.bf16.msra.mxu0 %v688_v29 }
  0x20   :  { %637 = vmatprep.subr.bf16.mxu0 %v691_v36 }
  0x21   :  { %630 = vmatpush3.bf16.msra.mxu1 %v690_v33 }
  0x22   :  { %451 = vmatmul.mubr.bf16.vlgmr.msra.gmra.mrb[0].mxu0 %v21_v35 }
  0x23   :  { %638 = vmatpush3.bf16.msra.mxu0 %v692_v39  ;;  %530 = vmatprep.mubr.bf16.mxu0 %v26_v52 }
  0x24   :  { %491 = vmatmul.mubr.bf16.vlgmr.msra.gmra.mrb[0].mxu1 %v23_v41  ;;  %639 = vmatprep.subr.bf16.mxu0 %v693_v42 }
  0x27   :  { %640 = vmatpush3.bf16.msra.mxu0 %v694_v43 }
  0x28   :  { %641 = vmatprep.subr.bf16.mxu0 %v695_v44 }
  0x2b   :  { %642 = vmatpush3.bf16.msra.mxu0 %v696_v45 }
  0x2c   :  { %643 = vmatprep.subr.bf16.mxu0 %v697_v46 }
  0x2f   :  { %644 = vmatpush3.bf16.msra.mxu0 %v698_v47 }
  0x30   :  { %645 = vmatprep.subr.bf16.mxu0 %v699_v48 }
  0x33   :  { %646 = vmatpush3.bf16.msra.mxu0 %v700_v49 }
  0x34   :  { %647 = vmatprep.subr.bf16.mxu0 %v701_v50 }
  0x37   :  { %648 = vmatpush3.bf16.msra.mxu0 %v702_v53 }
  0x38   :  { %649 = vmatprep.subr.bf16.mxu0 %v703_v54 }
  0x3b   :  { %650 = vmatpush3.bf16.msra.mxu0 %v704_v55 }
  0x3c   :  { %651 = vmatprep.subr.bf16.mxu0 %v705_v56 }
  0x3f   :  { %652 = vmatpush3.bf16.msra.mxu0 %v706_v57 }
  0x42   :  { %531 = vmatmul.mubr.bf16.vlgmr.msra.gmra.mrb[4].mxu0 %v25_v59 }
  0xf5   :  { %v609_v60 = vpop.f32.mrb[0].mxu0 }
  0xf6   :  { %v610_v62 = vpop.f32.mrb[1].mxu0 }
  0xf7   :  { %v611_v63 = vadd.f32 %v610_v62, %v609_v60  ;;  %v612_v0 = vpop.f32.mrb[2].mxu0  ;;  %v631_v1 = vpop.f32.mrb[0].mxu1 }
  0xf8   :  { %v613_v2 = vpop.f32.mrb[3].mxu0  ;;  %v632_v4 = vpop.f32.mrb[1].mxu1 }
  0xf9   :  { %v453_v3 = vadd.f32 %v611_v63, %v544_v61  ;;  %v633_v5 = vadd.f32 %v632_v4, %v631_v1  ;;  %v634_v6 = vpop.f32.mrb[2].mxu1 }
  0xfa   :  { %v635_v7 = vpop.f32.mrb[3].mxu1 }
  0xfb   :  { %v493_v8 = vadd.f32 %v633_v5, %v453_v3 }
 0x115   :  { %v653_v9 = vpop.f32.mrb[4].mxu0 }
 0x116   :  { %v654_v10 = vpop.f32.mrb[5].mxu0 }
 0x117   :  { %v655_v11 = vadd.f32 %v654_v10, %v653_v9  ;;  %v656_v12 = vpop.f32.mrb[6].mxu0 }
 0x118   :  { %v657_v13 = vpop.f32.mrb[7].mxu0 }
 0x119   :  { %v533_v14 = vadd.f32 %v655_v11, %v493_v8 }
 0x11b   :  { %539 = vst.msk [vmem:[%s898_s3] sm:$0xff] %vm538_vm0, %v533_v14 }

</bundles_post_ra>
